<compile_context>
chip_gen: v7x
topology: tpu7x:2x2x1
jax: 0.10.0
libtpu: 0.0.40
codegen_flags: <defaults>
</compile_context>

<pallas_src>
import functools

import jax
import jax.numpy as jnp
from jax.experimental import pallas as pl
from jax.experimental.pallas import tpu as pltpu


_VMEM_LIMIT = 32 * 1024 * 1024          # safe scoped-VMEM budget on v5e/v6e/v7x
_ROW_TILES = (512, 256, 128, 64, 32, 16, 8)
_COL_TILES = (1024, 512, 256, 128)


def _pick_tile(dim, candidates):
    """Largest candidate that exactly divides `dim`; else the full dim.

    Exact divisors avoid partial edge blocks, and every candidate is a
    multiple of 8 (rows) / 128 (cols) so the (8,128) block rule always holds.
    """
    for c in candidates:
        if dim % c == 0:
            return c
    return dim


# ----------------------------------------------------------------------------
# Pallas kernels
# ----------------------------------------------------------------------------

def _linear_kernel(*refs, act, pre_ln, add_residual, eps):
    """out = act(LN?(x) @ W + b) (+ residual).  Tile shapes: x (tm,K), W (K,tn)."""
    i = 0
    x_ref = refs[i]; i += 1
    if pre_ln:
        g_ref, bln_ref = refs[i], refs[i + 1]; i += 2
    w_ref, b_ref = refs[i], refs[i + 1]; i += 2
    if add_residual:
        r_ref = refs[i]; i += 1
    o_ref = refs[i]

    x = x_ref[...].astype(jnp.float32)
    if pre_ln:
        mu = jnp.mean(x, axis=-1, keepdims=True)
        var = jnp.mean(jnp.square(x - mu), axis=-1, keepdims=True)
        x = (x - mu) * jax.lax.rsqrt(var + eps)
        x = x * g_ref[...].astype(jnp.float32) + bln_ref[...].astype(jnp.float32)

    # bf16 MXU operands, f32 accumulation.
    y = jnp.dot(x.astype(jnp.bfloat16), w_ref[...].astype(jnp.bfloat16),
                preferred_element_type=jnp.float32)
    y = y + b_ref[...].astype(jnp.float32)

    if act == "gelu":
        # TODO(synk): PyTorch nn.GELU defaults to the exact erf form; tanh
        # approximation is used here for guaranteed Mosaic lowering.
        y = jax.nn.gelu(y, approximate=True)
    elif act == "sigmoid":
        y = jax.nn.sigmoid(y)

    if add_residual:
        y = y + r_ref[...].astype(jnp.float32)
    o_ref[...] = y.astype(o_ref.dtype)


def fused_linear(x, w, b, *, ln_g=None, ln_b=None, residual=None,
                 act="none", eps=1e-5):
    """y = act(LN?(x) @ w + b) (+ residual).  x:(M,K) w:(K,N) b:(N,)."""
    M, K = x.shape
    _, N = w.shape
    tm = _pick_tile(M, _ROW_TILES)
    tn = _pick_tile(N, _COL_TILES)
    grid = (M // tm, N // tn)

    pre_ln = ln_g is not None
    add_residual = residual is not None

    in_specs = [pl.BlockSpec((tm, K), lambda i, j: (i, 0))]
    args = [x]
    if pre_ln:
        in_specs += [pl.BlockSpec((1, K), lambda i, j: (0, 0)),
                     pl.BlockSpec((1, K), lambda i, j: (0, 0))]
        args += [ln_g.reshape(1, K), ln_b.reshape(1, K)]
    in_specs += [pl.BlockSpec((K, tn), lambda i, j: (0, j)),
                 pl.BlockSpec((1, tn), lambda i, j: (0, j))]
    args += [w, b.reshape(1, N)]
    if add_residual:
        in_specs += [pl.BlockSpec((tm, tn), lambda i, j: (i, j))]
        args += [residual]

    cost = pl.CostEstimate(
        flops=2 * M * N * K,
        transcendentals=(M * N if act != "none" else 0),
        bytes_accessed=4 * (M * K + K * N + M * N
                            + (M * N if add_residual else 0)))

    return pl.pallas_call(
        functools.partial(_linear_kernel, act=act, pre_ln=pre_ln,
                          add_residual=add_residual, eps=eps),
        out_shape=jax.ShapeDtypeStruct((M, N), x.dtype),
        grid=grid,
        in_specs=in_specs,
        out_specs=pl.BlockSpec((tm, tn), lambda i, j: (i, j)),
        compiler_params=pltpu.CompilerParams(
            dimension_semantics=("parallel", "parallel"),
            vmem_limit_bytes=_VMEM_LIMIT),
        cost_estimate=cost,
    )(*args)


def _mlp_kernel(x_ref, g_ref, bln_ref, w1_ref, b1_ref, w2_ref, b2_ref, o_ref,
                *, eps):
    """out = x + fc2(GELU(fc1(LN(x)))).  Hidden activation never leaves VMEM."""
    x = x_ref[...].astype(jnp.float32)
    mu = jnp.mean(x, axis=-1, keepdims=True)
    var = jnp.mean(jnp.square(x - mu), axis=-1, keepdims=True)
    h = (x - mu) * jax.lax.rsqrt(var + eps)
    h = h * g_ref[...].astype(jnp.float32) + bln_ref[...].astype(jnp.float32)

    h = jnp.dot(h.astype(jnp.bfloat16), w1_ref[...].astype(jnp.bfloat16),
                preferred_element_type=jnp.float32) + b1_ref[...].astype(jnp.float32)
    # TODO(synk): tanh-approx GELU vs PyTorch's exact erf GELU.
    h = jax.nn.gelu(h, approximate=True)
    h = jnp.dot(h.astype(jnp.bfloat16), w2_ref[...].astype(jnp.bfloat16),
                preferred_element_type=jnp.float32) + b2_ref[...].astype(jnp.float32)

    o_ref[...] = (x + h).astype(o_ref.dtype)


def fused_mlp(x, p, eps=1e-5):
    """Pre-LN MLP block with residual, fused in one kernel.  x:(M,D)."""
    M, D = x.shape
    Dm = p["fc1_w"].shape[1]
    tm = _pick_tile(M, _ROW_TILES)
    grid = (M // tm,)

    cost = pl.CostEstimate(
        flops=4 * M * D * Dm,
        transcendentals=M * Dm,
        bytes_accessed=4 * (2 * M * D + 2 * D * Dm + Dm + 2 * D))

    return pl.pallas_call(
        functools.partial(_mlp_kernel, eps=eps),
        out_shape=jax.ShapeDtypeStruct((M, D), x.dtype),
        grid=grid,
        in_specs=[
            pl.BlockSpec((tm, D), lambda i: (i, 0)),
            pl.BlockSpec((1, D), lambda i: (0, 0)),
            pl.BlockSpec((1, D), lambda i: (0, 0)),
            pl.BlockSpec((D, Dm), lambda i: (0, 0)),
            pl.BlockSpec((1, Dm), lambda i: (0, 0)),
            pl.BlockSpec((Dm, D), lambda i: (0, 0)),
            pl.BlockSpec((1, D), lambda i: (0, 0)),
        ],
        out_specs=pl.BlockSpec((tm, D), lambda i: (i, 0)),
        compiler_params=pltpu.CompilerParams(
            dimension_semantics=("parallel",),
            vmem_limit_bytes=_VMEM_LIMIT),
        cost_estimate=cost,
    )(x, p["ln2_g"].reshape(1, D), p["ln2_b"].reshape(1, D),
      p["fc1_w"], p["fc1_b"].reshape(1, Dm),
      p["fc2_w"], p["fc2_b"].reshape(1, D))


def _layernorm_kernel(x_ref, g_ref, b_ref, o_ref, *, eps):
    x = x_ref[...].astype(jnp.float32)
    mu = jnp.mean(x, axis=-1, keepdims=True)
    var = jnp.mean(jnp.square(x - mu), axis=-1, keepdims=True)
    y = (x - mu) * jax.lax.rsqrt(var + eps)
    o_ref[...] = (y * g_ref[...].astype(jnp.float32)
                  + b_ref[...].astype(jnp.float32)).astype(o_ref.dtype)


def layernorm(x, g, b, eps=1e-5):
    """Standalone row-wise LayerNorm (used only for the final encoder norm)."""
    M, D = x.shape
    tm = _pick_tile(M, _ROW_TILES)
    return pl.pallas_call(
        functools.partial(_layernorm_kernel, eps=eps),
        out_shape=jax.ShapeDtypeStruct((M, D), x.dtype),
        grid=(M // tm,),
        in_specs=[
            pl.BlockSpec((tm, D), lambda i: (i, 0)),
            pl.BlockSpec((1, D), lambda i: (0, 0)),
            pl.BlockSpec((1, D), lambda i: (0, 0)),
        ],
        out_specs=pl.BlockSpec((tm, D), lambda i: (i, 0)),
        compiler_params=pltpu.CompilerParams(
            dimension_semantics=("parallel",),
            vmem_limit_bytes=_VMEM_LIMIT),
    )(x, g.reshape(1, D), b.reshape(1, D))


def _attention_kernel(qkv_ref, o_ref, *, num_heads, scale):
    """Multi-head self attention for one batch element.

    qkv_ref block: (1, T, 3D) laid out [q_h0..q_hH | k_h0..k_hH | v_h0..v_hH].
    Heads are split with static lane slices (no reshape/transpose of the
    activation in XLA), and the output is written back as one lane-dense
    (T, D) block with heads concatenated along the lane axis.
    """
    qkv = qkv_ref[0].astype(jnp.float32)            # (T, 3D)
    D = qkv.shape[1] // 3
    Dh = D // num_heads

    outs = []
    for h in range(num_heads):                      # static unroll over heads
        q = qkv[:, h * Dh:(h + 1) * Dh].astype(jnp.bfloat16)
        k = qkv[:, D + h * Dh:D + (h + 1) * Dh].astype(jnp.bfloat16)
        v = qkv[:, 2 * D + h * Dh:2 * D + (h + 1) * Dh].astype(jnp.bfloat16)
        # q @ k^T without materializing a transpose.
        s = jax.lax.dot_general(q, k, (((1,), (1,)), ((), ())),
                                preferred_element_type=jnp.float32) * scale
        s = s - jnp.max(s, axis=-1, keepdims=True)
        p = jnp.exp(s)
        p = p * pl.reciprocal(jnp.sum(p, axis=-1, keepdims=True), approx=True)
        outs.append(jnp.dot(p.astype(jnp.bfloat16), v,
                            preferred_element_type=jnp.float32))
    o_ref[0] = jnp.concatenate(outs, axis=-1).astype(o_ref.dtype)


def attention(qkv, num_heads):
    """Softmax(q k^T / sqrt(Dh)) v for all heads of a batch element per step.

    qkv: (B, T, 3D) straight from the fused LN+QKV linear.  Returns (B, T, D).
    """
    B, T, threeD = qkv.shape
    D = threeD // 3
    Dh = D // num_heads
    scale = float(Dh) ** -0.5

    cost = pl.CostEstimate(
        flops=4 * B * T * T * D,
        transcendentals=B * num_heads * T * T,
        bytes_accessed=4 * (B * T * threeD + B * T * D))

    return pl.pallas_call(
        functools.partial(_attention_kernel, num_heads=num_heads, scale=scale),
        out_shape=jax.ShapeDtypeStruct((B, T, D), qkv.dtype),
        grid=(B,),
        in_specs=[pl.BlockSpec((1, T, threeD), lambda b: (b, 0, 0))],
        out_specs=pl.BlockSpec((1, T, D), lambda b: (b, 0, 0)),
        compiler_params=pltpu.CompilerParams(
            dimension_semantics=("parallel",),
            vmem_limit_bytes=_VMEM_LIMIT),
        cost_estimate=cost,
    )(qkv)


# ----------------------------------------------------------------------------
# Model glue (cheap reshapes / parameter handling only; no big XLA transposes)
# ----------------------------------------------------------------------------

def transformer_block(x, p, num_heads):
    """Pre-LN ViT block: x + MHA(LN(x)); x + MLP(LN(x)).  x:(B,T,D)."""
    B, T, D = x.shape
    x2 = x.reshape(B * T, D)

    # --- attention path: [LN + QKV] -> attention -> [proj + residual] ---
    qkv = fused_linear(x2, p["qkv_w"], p["qkv_b"],
                       ln_g=p["ln1_g"], ln_b=p["ln1_b"])        # (B*T, 3D)
    attn = attention(qkv.reshape(B, T, 3 * D), num_heads)       # (B, T, D)
    x2 = fused_linear(attn.reshape(B * T, D), p["proj_w"], p["proj_b"],
                      residual=x2)                              # (B*T, D)

    # --- MLP path: [LN + fc1 + GELU + fc2 + residual] fused ---
    x2 = fused_mlp(x2, p)

    return x2.reshape(B, T, D)


def encoder_forward(params, img, cfg):
    B, C, H, W = img.shape
    ps, D = cfg["patch_size"], cfg["emb_dim"]
    nH, nW = H // ps, W // ps
    nP = nH * nW

    # Patchify conv (kernel=stride=ps) == patch extraction + matmul (in Pallas).
    patches = img.reshape(B, C, nH, ps, nW, ps)
    patches = jnp.transpose(patches, (0, 2, 4, 1, 3, 5)).reshape(B * nP, C * ps * ps)
    tok = fused_linear(patches, params["patch_w"], params["patch_b"])  # (B*nP, D)
    tok = tok.reshape(B, nP, D)

    # Add pos emb (stored (nP,1,D) in 'hw b c' layout), prepend cls token.
    tok = tok + jnp.transpose(params["enc_pos"], (1, 0, 2))            # (B, nP, D)
    cls = jnp.broadcast_to(params["cls_token"].reshape(1, 1, D), (B, 1, D))
    x = jnp.concatenate([cls, tok], axis=1)                            # (B, T, D)

    for blk in params["enc_blocks"]:
        x = transformer_block(x, blk, cfg["enc_heads"])
    T = x.shape[1]
    x = layernorm(x.reshape(B * T, D), params["enc_ln_g"], params["enc_ln_b"])
    features = jnp.transpose(x.reshape(B, T, D), (1, 0, 2))            # (T, B, D)
    return features


def decoder_forward(params, features, cfg):
    T, B, D = features.shape
    ps, C = cfg["patch_size"], cfg["in_channels"]
    nH = cfg["img_size"] // ps
    nW = nH

    x = features + params["dec_pos"]                 # (T, B, D) + (T, 1, D)
    x = jnp.transpose(x, (1, 0, 2))                  # (B, T, D)
    for blk in params["dec_blocks"]:
        x = transformer_block(x, blk, cfg["dec_heads"])
    x = x[:, 1:, :]                                  # drop cls -> (B, nP, D)
    nP = x.shape[1]

    # Head linear + sigmoid gate fused in the Pallas linear kernel
    # (sigmoid is elementwise, so before/after patch2img is equivalent).
    patches = fused_linear(x.reshape(B * nP, D), params["head_w"],
                           params["head_b"], act="sigmoid")   # (B*nP, C*ps*ps)

    # '(h w) b (c p1 p2) -> b c (h p1) (w p2)'
    patches = patches.reshape(B, nH, nW, C, ps, ps)
    img = jnp.transpose(patches, (0, 3, 1, 4, 2, 5)).reshape(B, C, nH * ps, nW * ps)
    return img


def dae_vit_forward(params, img, cfg):
    features = encoder_forward(params, img, cfg)
    noisy_features = features          # channel = nn.Identity()
    return decoder_forward(params, noisy_features, cfg)


# ----------------------------------------------------------------------------
# Deterministic parameter init
# ----------------------------------------------------------------------------

def _normal(key, shape, std=0.02):
    return std * jax.random.normal(key, shape, jnp.float32)


def _init_block(key, D, mlp_ratio=4):
    ks = jax.random.split(key, 4)
    Dm = D * mlp_ratio
    return dict(
        ln1_g=jnp.ones((D,), jnp.float32), ln1_b=jnp.zeros((D,), jnp.float32),
        qkv_w=_normal(ks[0], (D, 3 * D)), qkv_b=jnp.zeros((3 * D,), jnp.float32),
        proj_w=_normal(ks[1], (D, D)), proj_b=jnp.zeros((D,), jnp.float32),
        ln2_g=jnp.ones((D,), jnp.float32), ln2_b=jnp.zeros((D,), jnp.float32),
        fc1_w=_normal(ks[2], (D, Dm)), fc1_b=jnp.zeros((Dm,), jnp.float32),
        fc2_w=_normal(ks[3], (Dm, D)), fc2_b=jnp.zeros((D,), jnp.float32),
    )


def init_params(key, cfg):
    C, ps, D = cfg["in_channels"], cfg["patch_size"], cfg["emb_dim"]
    nP = (cfg["img_size"] // ps) ** 2
    n_keys = 4 + cfg["enc_layers"] + cfg["dec_layers"]
    ks = jax.random.split(key, n_keys)
    ki = iter(ks)
    params = dict(
        # conv weight (D, C, ps, ps) stored flattened+transposed: (C*ps*ps, D)
        patch_w=_normal(next(ki), (C * ps * ps, D)),
        patch_b=jnp.zeros((D,), jnp.float32),
        cls_token=_normal(next(ki), (1, 1, D)),
        enc_pos=_normal(next(ki), (nP, 1, D)),
        enc_ln_g=jnp.ones((D,), jnp.float32),
        enc_ln_b=jnp.zeros((D,), jnp.float32),
        enc_blocks=[_init_block(next(ki), D) for _ in range(cfg["enc_layers"])],
        dec_pos=_normal(next(ki), (nP + 1, 1, D)),
        dec_blocks=[_init_block(next(ki), D) for _ in range(cfg["dec_layers"])],
        head_w=None, head_b=None,
    )
    # head: D -> C*ps*ps
    kh = jax.random.fold_in(key, 12345)
    params["head_w"] = _normal(kh, (D, C * ps * ps))
    params["head_b"] = jnp.zeros((C * ps * ps,), jnp.float32)
    return params


# ----------------------------------------------------------------------------

if __name__ == "__main__":
    cfg = dict(
        in_channels=3, img_size=16, patch_size=4, emb_dim=32,
        enc_layers=2, enc_heads=4, dec_layers=2, dec_heads=4,
    )

    key = jax.random.PRNGKey(0)
    kp, kx = jax.random.split(key)
    params = init_params(kp, cfg)
    img = jax.random.normal(
        kx, (2, cfg["in_channels"], cfg["img_size"], cfg["img_size"]), jnp.float32)

    fwd = jax.jit(lambda p, x: dae_vit_forward(p, x, cfg))
    out = fwd(params, img)
    out = jax.block_until_ready(out)

    assert out.shape == img.shape, (out.shape, img.shape)
    assert bool(jnp.all(jnp.isfinite(out)))
    assert bool(jnp.all((out >= 0.0) & (out <= 1.0)))  # sigmoid gate range
    print("KERNEL_OK")
</pallas_src>

<mosaic_0001>
module attributes {stable_mosaic.version = 11 : i64} {
  func.func @_linear_kernel(%arg0: i32, %arg1: i32, %arg2: memref<32x48xf32, #tpu.memory_space<vmem>>, %arg3: memref<48x32xf32, #tpu.memory_space<vmem>>, %arg4: memref<1x32xf32, #tpu.memory_space<vmem>>, %arg5: memref<32x32xf32, #tpu.memory_space<vmem>>) attributes {dimension_semantics = [#tpu.dimension_semantics<parallel>, #tpu.dimension_semantics<parallel>], iteration_bounds = array<i64: 1, 1>, scalar_prefetch = 0 : i64, scratch_operands = 0 : i64, tpu.core_type = #tpu.core_type<tc>, window_params = [{transform_indices = @transform_0, window_bounds = array<i64: 32, 48>}, {transform_indices = @transform_1, window_bounds = array<i64: 48, 32>}, {transform_indices = @transform_2, window_bounds = array<i64: 1, 32>}, {transform_indices = @transform_3, window_bounds = array<i64: 32, 32>}]} {
    %c0 = arith.constant 0 : index
    %c0_0 = arith.constant 0 : index
    %0 = vector.load %arg2[%c0, %c0_0] : memref<32x48xf32, #tpu.memory_space<vmem>>, vector<32x48xf32>
    %1 = arith.truncf %0 : vector<32x48xf32> to vector<32x48xbf16>
    %c0_1 = arith.constant 0 : index
    %c0_2 = arith.constant 0 : index
    %2 = vector.load %arg3[%c0_1, %c0_2] : memref<48x32xf32, #tpu.memory_space<vmem>>, vector<48x32xf32>
    %3 = arith.truncf %2 : vector<48x32xf32> to vector<48x32xbf16>
    %cst = arith.constant dense<0.000000e+00> : vector<32x32xf32>
    %4 = tpu.matmul %1, %3, %cst {dimension_numbers = #tpu.dot_dimension_numbers<[1], [0], [0], [1], [0, 0, 1, 1], [], []>} : vector<32x48xbf16>, vector<48x32xbf16>, vector<32x32xf32> -> vector<32x32xf32>
    %c0_3 = arith.constant 0 : index
    %c0_4 = arith.constant 0 : index
    %5 = vector.load %arg4[%c0_3, %c0_4] : memref<1x32xf32, #tpu.memory_space<vmem>>, vector<1x32xf32>
    %6 = vector.broadcast %5 : vector<1x32xf32> to vector<32x32xf32>
    %7 = arith.addf %4, %6 : vector<32x32xf32>
    %c0_5 = arith.constant 0 : index
    %c0_6 = arith.constant 0 : index
    %8 = vector.load %arg5[%c0_5, %c0_6] : memref<32x32xf32, #tpu.memory_space<vmem>>, vector<32x32xf32>
    tpu.vector_store %arg5[%c0_5, %c0_6], %7 {strides = array<i32>} : memref<32x32xf32, #tpu.memory_space<vmem>>, vector<32x32xf32>,
    return
  }
  func.func @transform_0(%arg0: i32, %arg1: i32) -> (i32, i32) {
    %c0_i32 = arith.constant 0 : i32
    %c0_i32_0 = arith.constant 0 : i32
    return %arg0, %c0_i32 : i32, i32
  }
  func.func @transform_1(%arg0: i32, %arg1: i32) -> (i32, i32) {
    %c0_i32 = arith.constant 0 : i32
    %c0_i32_0 = arith.constant 0 : i32
    return %c0_i32, %arg1 : i32, i32
  }
  func.func @transform_2(%arg0: i32, %arg1: i32) -> (i32, i32) {
    %c0_i32 = arith.constant 0 : i32
    %c0_i32_0 = arith.constant 0 : i32
    return %c0_i32, %arg1 : i32, i32
  }
  func.func @transform_3(%arg0: i32, %arg1: i32) -> (i32, i32) {
    %c0_i32 = arith.constant 0 : i32
    return %arg0, %arg1 : i32, i32
  }
}

module attributes {stable_mosaic.version = 11 : i64} {
  func.func @_linear_kernel(%arg0: i32, %arg1: i32, %arg2: memref<34x32xf32, #tpu.memory_space<vmem>>, %arg3: memref<1x32xf32, #tpu.memory_space<vmem>>, %arg4: memref<1x32xf32, #tpu.memory_space<vmem>>, %arg5: memref<32x96xf32, #tpu.memory_space<vmem>>, %arg6: memref<1x96xf32, #tpu.memory_space<vmem>>, %arg7: memref<34x96xf32, #tpu.memory_space<vmem>>) attributes {dimension_semantics = [#tpu.dimension_semantics<parallel>, #tpu.dimension_semantics<parallel>], iteration_bounds = array<i64: 1, 1>, scalar_prefetch = 0 : i64, scratch_operands = 0 : i64, tpu.core_type = #tpu.core_type<tc>, window_params = [{transform_indices = @transform_0, window_bounds = array<i64: 34, 32>}, {pipeline_mode = #tpu.pipeline_mode<synchronous>, transform_indices = @transform_1, window_bounds = array<i64: 1, 32>}, {pipeline_mode = #tpu.pipeline_mode<synchronous>, transform_indices = @transform_2, window_bounds = array<i64: 1, 32>}, {transform_indices = @transform_3, window_bounds = array<i64: 32, 96>}, {transform_indices = @transform_4, window_bounds = array<i64: 1, 96>}, {transform_indices = @transform_5, window_bounds = array<i64: 34, 96>}]} {
    %c0 = arith.constant 0 : index
    %c0_0 = arith.constant 0 : index
    %0 = vector.load %arg2[%c0, %c0_0] : memref<34x32xf32, #tpu.memory_space<vmem>>, vector<34x32xf32>
    %cst = arith.constant dense<0.000000e+00> : vector<34xf32>
    %1 = vector.multi_reduction <add>, %0, %cst [1] : vector<34x32xf32> to vector<34xf32>
    %2 = vector.shape_cast %1 : vector<34xf32> to vector<34x1xf32>
    %cst_1 = arith.constant 3.200000e+01 : f32
    %3 = vector.broadcast %cst_1 : f32 to vector<34x1xf32>
    %4 = arith.divf %2, %3 : vector<34x1xf32>
    %5 = vector.broadcast %4 : vector<34x1xf32> to vector<34x32xf32>
    %6 = arith.subf %0, %5 : vector<34x32xf32>
    %7 = arith.mulf %6, %6 : vector<34x32xf32>
    %cst_2 = arith.constant dense<0.000000e+00> : vector<34xf32>
    %8 = vector.multi_reduction <add>, %7, %cst_2 [1] : vector<34x32xf32> to vector<34xf32>
    %9 = vector.shape_cast %8 : vector<34xf32> to vector<34x1xf32>
    %cst_3 = arith.constant 3.200000e+01 : f32
    %10 = vector.broadcast %cst_3 : f32 to vector<34x1xf32>
    %11 = arith.divf %9, %10 : vector<34x1xf32>
    %12 = vector.broadcast %4 : vector<34x1xf32> to vector<34x32xf32>
    %13 = arith.subf %0, %12 : vector<34x32xf32>
    %cst_4 = arith.constant 9.99999974E-6 : f32
    %14 = vector.broadcast %cst_4 : f32 to vector<34x1xf32>
    %15 = arith.addf %11, %14 : vector<34x1xf32>
    %16 = math.rsqrt %15 : vector<34x1xf32>
    %17 = vector.broadcast %16 : vector<34x1xf32> to vector<34x32xf32>
    %18 = arith.mulf %13, %17 : vector<34x32xf32>
    %c0_5 = arith.constant 0 : index
    %c0_6 = arith.constant 0 : index
    %19 = vector.load %arg3[%c0_5, %c0_6] : memref<1x32xf32, #tpu.memory_space<vmem>>, vector<1x32xf32>
    %20 = vector.broadcast %19 : vector<1x32xf32> to vector<34x32xf32>
    %21 = arith.mulf %18, %20 : vector<34x32xf32>
    %c0_7 = arith.constant 0 : index
    %c0_8 = arith.constant 0 : index
    %22 = vector.load %arg4[%c0_7, %c0_8] : memref<1x32xf32, #tpu.memory_space<vmem>>, vector<1x32xf32>
    %23 = vector.broadcast %22 : vector<1x32xf32> to vector<34x32xf32>
    %24 = arith.addf %21, %23 : vector<34x32xf32>
    %25 = arith.truncf %24 : vector<34x32xf32> to vector<34x32xbf16>
    %c0_9 = arith.constant 0 : index
    %c0_10 = arith.constant 0 : index
    %26 = vector.load %arg5[%c0_9, %c0_10] : memref<32x96xf32, #tpu.memory_space<vmem>>, vector<32x96xf32>
    %27 = arith.truncf %26 : vector<32x96xf32> to vector<32x96xbf16>
    %cst_11 = arith.constant dense<0.000000e+00> : vector<34x96xf32>
    %28 = tpu.matmul %25, %27, %cst_11 {dimension_numbers = #tpu.dot_dimension_numbers<[1], [0], [0], [1], [0, 0, 1, 1], [], []>} : vector<34x32xbf16>, vector<32x96xbf16>, vector<34x96xf32> -> vector<34x96xf32>
    %c0_12 = arith.constant 0 : index
    %c0_13 = arith.constant 0 : index
    %29 = vector.load %arg6[%c0_12, %c0_13] : memref<1x96xf32, #tpu.memory_space<vmem>>, vector<1x96xf32>
    %30 = vector.broadcast %29 : vector<1x96xf32> to vector<34x96xf32>
    %31 = arith.addf %28, %30 : vector<34x96xf32>
    %c0_14 = arith.constant 0 : index
    %c0_15 = arith.constant 0 : index
    %32 = vector.load %arg7[%c0_14, %c0_15] : memref<34x96xf32, #tpu.memory_space<vmem>>, vector<34x96xf32>
    tpu.vector_store %arg7[%c0_14, %c0_15], %31 {strides = array<i32>} : memref<34x96xf32, #tpu.memory_space<vmem>>, vector<34x96xf32>,
    return
  }
  func.func @transform_0(%arg0: i32, %arg1: i32) -> (i32, i32) {
    %c0_i32 = arith.constant 0 : i32
    %c0_i32_0 = arith.constant 0 : i32
    return %arg0, %c0_i32 : i32, i32
  }
  func.func @transform_1(%arg0: i32, %arg1: i32) -> (i32, i32) {
    %c0_i32 = arith.constant 0 : i32
    %c0_i32_0 = arith.constant 0 : i32
    %c0_i32_1 = arith.constant 0 : i32
    return %c0_i32, %c0_i32_0 : i32, i32
  }
  func.func @transform_2(%arg0: i32, %arg1: i32) -> (i32, i32) {
    %c0_i32 = arith.constant 0 : i32
    %c0_i32_0 = arith.constant 0 : i32
    %c0_i32_1 = arith.constant 0 : i32
    return %c0_i32, %c0_i32_0 : i32, i32
  }
  func.func @transform_3(%arg0: i32, %arg1: i32) -> (i32, i32) {
    %c0_i32 = arith.constant 0 : i32
    %c0_i32_0 = arith.constant 0 : i32
    return %c0_i32, %arg1 : i32, i32
  }
  func.func @transform_4(%arg0: i32, %arg1: i32) -> (i32, i32) {
    %c0_i32 = arith.constant 0 : i32
    %c0_i32_0 = arith.constant 0 : i32
    return %c0_i32, %arg1 : i32, i32
  }
  func.func @transform_5(%arg0: i32, %arg1: i32) -> (i32, i32) {
    %c0_i32 = arith.constant 0 : i32
    return %arg0, %arg1 : i32, i32
  }
}

module attributes {stable_mosaic.version = 11 : i64} {
  func.func @_linear_kernel(%arg0: i32, %arg1: i32, %arg2: memref<34x32xf32, #tpu.memory_space<vmem>>, %arg3: memref<32x32xf32, #tpu.memory_space<vmem>>, %arg4: memref<1x32xf32, #tpu.memory_space<vmem>>, %arg5: memref<34x32xf32, #tpu.memory_space<vmem>>, %arg6: memref<34x32xf32, #tpu.memory_space<vmem>>) attributes {dimension_semantics = [#tpu.dimension_semantics<parallel>, #tpu.dimension_semantics<parallel>], iteration_bounds = array<i64: 1, 1>, scalar_prefetch = 0 : i64, scratch_operands = 0 : i64, tpu.core_type = #tpu.core_type<tc>, window_params = [{transform_indices = @transform_0, window_bounds = array<i64: 34, 32>}, {transform_indices = @transform_1, window_bounds = array<i64: 32, 32>}, {transform_indices = @transform_2, window_bounds = array<i64: 1, 32>}, {transform_indices = @transform_3, window_bounds = array<i64: 34, 32>}, {transform_indices = @transform_4, window_bounds = array<i64: 34, 32>}]} {
    %c0 = arith.constant 0 : index
    %c0_0 = arith.constant 0 : index
    %0 = vector.load %arg2[%c0, %c0_0] : memref<34x32xf32, #tpu.memory_space<vmem>>, vector<34x32xf32>
    %1 = arith.truncf %0 : vector<34x32xf32> to vector<34x32xbf16>
    %c0_1 = arith.constant 0 : index
    %c0_2 = arith.constant 0 : index
    %2 = vector.load %arg3[%c0_1, %c0_2] : memref<32x32xf32, #tpu.memory_space<vmem>>, vector<32x32xf32>
    %3 = arith.truncf %2 : vector<32x32xf32> to vector<32x32xbf16>
    %cst = arith.constant dense<0.000000e+00> : vector<34x32xf32>
    %4 = tpu.matmul %1, %3, %cst {dimension_numbers = #tpu.dot_dimension_numbers<[1], [0], [0], [1], [0, 0, 1, 1], [], []>} : vector<34x32xbf16>, vector<32x32xbf16>, vector<34x32xf32> -> vector<34x32xf32>
    %c0_3 = arith.constant 0 : index
    %c0_4 = arith.constant 0 : index
    %5 = vector.load %arg4[%c0_3, %c0_4] : memref<1x32xf32, #tpu.memory_space<vmem>>, vector<1x32xf32>
    %6 = vector.broadcast %5 : vector<1x32xf32> to vector<34x32xf32>
    %7 = arith.addf %4, %6 : vector<34x32xf32>
    %c0_5 = arith.constant 0 : index
    %c0_6 = arith.constant 0 : index
    %8 = vector.load %arg5[%c0_5, %c0_6] : memref<34x32xf32, #tpu.memory_space<vmem>>, vector<34x32xf32>
    %9 = arith.addf %7, %8 : vector<34x32xf32>
    %c0_7 = arith.constant 0 : index
    %c0_8 = arith.constant 0 : index
    %10 = vector.load %arg6[%c0_7, %c0_8] : memref<34x32xf32, #tpu.memory_space<vmem>>, vector<34x32xf32>
    tpu.vector_store %arg6[%c0_7, %c0_8], %9 {strides = array<i32>} : memref<34x32xf32, #tpu.memory_space<vmem>>, vector<34x32xf32>,
    return
  }
  func.func @transform_0(%arg0: i32, %arg1: i32) -> (i32, i32) {
    %c0_i32 = arith.constant 0 : i32
    %c0_i32_0 = arith.constant 0 : i32
    return %arg0, %c0_i32 : i32, i32
  }
  func.func @transform_1(%arg0: i32, %arg1: i32) -> (i32, i32) {
    %c0_i32 = arith.constant 0 : i32
    %c0_i32_0 = arith.constant 0 : i32
    return %c0_i32, %arg1 : i32, i32
  }
  func.func @transform_2(%arg0: i32, %arg1: i32) -> (i32, i32) {
    %c0_i32 = arith.constant 0 : i32
    %c0_i32_0 = arith.constant 0 : i32
    return %c0_i32, %arg1 : i32, i32
  }
  func.func @transform_3(%arg0: i32, %arg1: i32) -> (i32, i32) {
    %c0_i32 = arith.constant 0 : i32
    return %arg0, %arg1 : i32, i32
  }
  func.func @transform_4(%arg0: i32, %arg1: i32) -> (i32, i32) {
    %c0_i32 = arith.constant 0 : i32
    return %arg0, %arg1 : i32, i32
  }
}

module attributes {stable_mosaic.version = 11 : i64} {
  func.func @_attention_kernel(%arg0: i32, %arg1: memref<1x17x96xf32, #tpu.memory_space<vmem>>, %arg2: memref<1x17x32xf32, #tpu.memory_space<vmem>>) attributes {dimension_semantics = [#tpu.dimension_semantics<parallel>], iteration_bounds = array<i64: 2>, scalar_prefetch = 0 : i64, scratch_operands = 0 : i64, tpu.core_type = #tpu.core_type<tc>, window_params = [{transform_indices = @transform_0, window_bounds = array<i64: 1, 17, 96>}, {transform_indices = @transform_1, window_bounds = array<i64: 1, 17, 32>}]} {
    %c0 = arith.constant 0 : index
    %c0_0 = arith.constant 0 : index
    %c0_1 = arith.constant 0 : index
    %0 = vector.load %arg1[%c0, %c0_0, %c0_1] : memref<1x17x96xf32, #tpu.memory_space<vmem>>, vector<1x17x96xf32>
    %1 = vector.shape_cast %0 : vector<1x17x96xf32> to vector<17x96xf32>
    %2 = vector.extract_strided_slice %1 {offsets = [0, 0], sizes = [17, 8], strides = [1, 1]} : vector<17x96xf32> to vector<17x8xf32>
    %3 = arith.truncf %2 : vector<17x8xf32> to vector<17x8xbf16>
    %4 = vector.extract_strided_slice %1 {offsets = [0, 32], sizes = [17, 8], strides = [1, 1]} : vector<17x96xf32> to vector<17x8xf32>
    %5 = arith.truncf %4 : vector<17x8xf32> to vector<17x8xbf16>
    %6 = vector.extract_strided_slice %1 {offsets = [0, 64], sizes = [17, 8], strides = [1, 1]} : vector<17x96xf32> to vector<17x8xf32>
    %7 = arith.truncf %6 : vector<17x8xf32> to vector<17x8xbf16>
    %cst = arith.constant dense<0.000000e+00> : vector<17x17xf32>
    %8 = tpu.matmul %3, %5, %cst {dimension_numbers = #tpu.dot_dimension_numbers<[1], [1], [0], [0], [0, 0, 1, 0], [], []>} : vector<17x8xbf16>, vector<17x8xbf16>, vector<17x17xf32> -> vector<17x17xf32>
    %cst_2 = arith.constant 0.353553385 : f32
    %9 = vector.broadcast %cst_2 : f32 to vector<17x17xf32>
    %10 = arith.mulf %8, %9 : vector<17x17xf32>
    %cst_3 = arith.constant dense<0xFF800000> : vector<17xf32>
    %11 = vector.multi_reduction <maximumf>, %10, %cst_3 [1] : vector<17x17xf32> to vector<17xf32>
    %12 = vector.shape_cast %11 : vector<17xf32> to vector<17x1xf32>
    %13 = vector.broadcast %12 : vector<17x1xf32> to vector<17x17xf32>
    %14 = arith.subf %10, %13 : vector<17x17xf32>
    %15 = math.exp %14 : vector<17x17xf32>
    %cst_4 = arith.constant dense<0.000000e+00> : vector<17xf32>
    %16 = vector.multi_reduction <add>, %15, %cst_4 [1] : vector<17x17xf32> to vector<17xf32>
    %17 = vector.shape_cast %16 : vector<17xf32> to vector<17x1xf32>
    %18 = tpu.reciprocal %17 {approx = true} : vector<17x1xf32> -> vector<17x1xf32>
    %19 = vector.broadcast %18 : vector<17x1xf32> to vector<17x17xf32>
    %20 = arith.mulf %15, %19 : vector<17x17xf32>
    %21 = arith.truncf %20 : vector<17x17xf32> to vector<17x17xbf16>
    %cst_5 = arith.constant dense<0.000000e+00> : vector<17x8xf32>
    %22 = tpu.matmul %21, %7, %cst_5 {dimension_numbers = #tpu.dot_dimension_numbers<[1], [0], [0], [1], [0, 0, 1, 1], [], []>} : vector<17x17xbf16>, vector<17x8xbf16>, vector<17x8xf32> -> vector<17x8xf32>
    %23 = vector.extract_strided_slice %1 {offsets = [0, 8], sizes = [17, 8], strides = [1, 1]} : vector<17x96xf32> to vector<17x8xf32>
    %24 = arith.truncf %23 : vector<17x8xf32> to vector<17x8xbf16>
    %25 = vector.extract_strided_slice %1 {offsets = [0, 40], sizes = [17, 8], strides = [1, 1]} : vector<17x96xf32> to vector<17x8xf32>
    %26 = arith.truncf %25 : vector<17x8xf32> to vector<17x8xbf16>
    %27 = vector.extract_strided_slice %1 {offsets = [0, 72], sizes = [17, 8], strides = [1, 1]} : vector<17x96xf32> to vector<17x8xf32>
    %28 = arith.truncf %27 : vector<17x8xf32> to vector<17x8xbf16>
    %cst_6 = arith.constant dense<0.000000e+00> : vector<17x17xf32>
    %29 = tpu.matmul %24, %26, %cst_6 {dimension_numbers = #tpu.dot_dimension_numbers<[1], [1], [0], [0], [0, 0, 1, 0], [], []>} : vector<17x8xbf16>, vector<17x8xbf16>, vector<17x17xf32> -> vector<17x17xf32>
    %cst_7 = arith.constant 0.353553385 : f32
    %30 = vector.broadcast %cst_7 : f32 to vector<17x17xf32>
    %31 = arith.mulf %29, %30 : vector<17x17xf32>
    %cst_8 = arith.constant dense<0xFF800000> : vector<17xf32>
    %32 = vector.multi_reduction <maximumf>, %31, %cst_8 [1] : vector<17x17xf32> to vector<17xf32>
    %33 = vector.shape_cast %32 : vector<17xf32> to vector<17x1xf32>
    %34 = vector.broadcast %33 : vector<17x1xf32> to vector<17x17xf32>
    %35 = arith.subf %31, %34 : vector<17x17xf32>
    %36 = math.exp %35 : vector<17x17xf32>
    %cst_9 = arith.constant dense<0.000000e+00> : vector<17xf32>
    %37 = vector.multi_reduction <add>, %36, %cst_9 [1] : vector<17x17xf32> to vector<17xf32>
    %38 = vector.shape_cast %37 : vector<17xf32> to vector<17x1xf32>
    %39 = tpu.reciprocal %38 {approx = true} : vector<17x1xf32> -> vector<17x1xf32>
    %40 = vector.broadcast %39 : vector<17x1xf32> to vector<17x17xf32>
    %41 = arith.mulf %36, %40 : vector<17x17xf32>
    %42 = arith.truncf %41 : vector<17x17xf32> to vector<17x17xbf16>
    %cst_10 = arith.constant dense<0.000000e+00> : vector<17x8xf32>
    %43 = tpu.matmul %42, %28, %cst_10 {dimension_numbers = #tpu.dot_dimension_numbers<[1], [0], [0], [1], [0, 0, 1, 1], [], []>} : vector<17x17xbf16>, vector<17x8xbf16>, vector<17x8xf32> -> vector<17x8xf32>
    %44 = vector.extract_strided_slice %1 {offsets = [0, 16], sizes = [17, 8], strides = [1, 1]} : vector<17x96xf32> to vector<17x8xf32>
    %45 = arith.truncf %44 : vector<17x8xf32> to vector<17x8xbf16>
    %46 = vector.extract_strided_slice %1 {offsets = [0, 48], sizes = [17, 8], strides = [1, 1]} : vector<17x96xf32> to vector<17x8xf32>
    %47 = arith.truncf %46 : vector<17x8xf32> to vector<17x8xbf16>
    %48 = vector.extract_strided_slice %1 {offsets = [0, 80], sizes = [17, 8], strides = [1, 1]} : vector<17x96xf32> to vector<17x8xf32>
    %49 = arith.truncf %48 : vector<17x8xf32> to vector<17x8xbf16>
    %cst_11 = arith.constant dense<0.000000e+00> : vector<17x17xf32>
    %50 = tpu.matmul %45, %47, %cst_11 {dimension_numbers = #tpu.dot_dimension_numbers<[1], [1], [0], [0], [0, 0, 1, 0], [], []>} : vector<17x8xbf16>, vector<17x8xbf16>, vector<17x17xf32> -> vector<17x17xf32>
    %cst_12 = arith.constant 0.353553385 : f32
    %51 = vector.broadcast %cst_12 : f32 to vector<17x17xf32>
    %52 = arith.mulf %50, %51 : vector<17x17xf32>
    %cst_13 = arith.constant dense<0xFF800000> : vector<17xf32>
    %53 = vector.multi_reduction <maximumf>, %52, %cst_13 [1] : vector<17x17xf32> to vector<17xf32>
    %54 = vector.shape_cast %53 : vector<17xf32> to vector<17x1xf32>
    %55 = vector.broadcast %54 : vector<17x1xf32> to vector<17x17xf32>
    %56 = arith.subf %52, %55 : vector<17x17xf32>
    %57 = math.exp %56 : vector<17x17xf32>
    %cst_14 = arith.constant dense<0.000000e+00> : vector<17xf32>
    %58 = vector.multi_reduction <add>, %57, %cst_14 [1] : vector<17x17xf32> to vector<17xf32>
    %59 = vector.shape_cast %58 : vector<17xf32> to vector<17x1xf32>
    %60 = tpu.reciprocal %59 {approx = true} : vector<17x1xf32> -> vector<17x1xf32>
    %61 = vector.broadcast %60 : vector<17x1xf32> to vector<17x17xf32>
    %62 = arith.mulf %57, %61 : vector<17x17xf32>
    %63 = arith.truncf %62 : vector<17x17xf32> to vector<17x17xbf16>
    %cst_15 = arith.constant dense<0.000000e+00> : vector<17x8xf32>
    %64 = tpu.matmul %63, %49, %cst_15 {dimension_numbers = #tpu.dot_dimension_numbers<[1], [0], [0], [1], [0, 0, 1, 1], [], []>} : vector<17x17xbf16>, vector<17x8xbf16>, vector<17x8xf32> -> vector<17x8xf32>
    %65 = vector.extract_strided_slice %1 {offsets = [0, 24], sizes = [17, 8], strides = [1, 1]} : vector<17x96xf32> to vector<17x8xf32>
    %66 = arith.truncf %65 : vector<17x8xf32> to vector<17x8xbf16>
    %67 = vector.extract_strided_slice %1 {offsets = [0, 56], sizes = [17, 8], strides = [1, 1]} : vector<17x96xf32> to vector<17x8xf32>
    %68 = arith.truncf %67 : vector<17x8xf32> to vector<17x8xbf16>
    %69 = vector.extract_strided_slice %1 {offsets = [0, 88], sizes = [17, 8], strides = [1, 1]} : vector<17x96xf32> to vector<17x8xf32>
    %70 = arith.truncf %69 : vector<17x8xf32> to vector<17x8xbf16>
    %cst_16 = arith.constant dense<0.000000e+00> : vector<17x17xf32>
    %71 = tpu.matmul %66, %68, %cst_16 {dimension_numbers = #tpu.dot_dimension_numbers<[1], [1], [0], [0], [0, 0, 1, 0], [], []>} : vector<17x8xbf16>, vector<17x8xbf16>, vector<17x17xf32> -> vector<17x17xf32>
    %cst_17 = arith.constant 0.353553385 : f32
    %72 = vector.broadcast %cst_17 : f32 to vector<17x17xf32>
    %73 = arith.mulf %71, %72 : vector<17x17xf32>
    %cst_18 = arith.constant dense<0xFF800000> : vector<17xf32>
    %74 = vector.multi_reduction <maximumf>, %73, %cst_18 [1] : vector<17x17xf32> to vector<17xf32>
    %75 = vector.shape_cast %74 : vector<17xf32> to vector<17x1xf32>
    %76 = vector.broadcast %75 : vector<17x1xf32> to vector<17x17xf32>
    %77 = arith.subf %73, %76 : vector<17x17xf32>
    %78 = math.exp %77 : vector<17x17xf32>
    %cst_19 = arith.constant dense<0.000000e+00> : vector<17xf32>
    %79 = vector.multi_reduction <add>, %78, %cst_19 [1] : vector<17x17xf32> to vector<17xf32>
    %80 = vector.shape_cast %79 : vector<17xf32> to vector<17x1xf32>
    %81 = tpu.reciprocal %80 {approx = true} : vector<17x1xf32> -> vector<17x1xf32>
    %82 = vector.broadcast %81 : vector<17x1xf32> to vector<17x17xf32>
    %83 = arith.mulf %78, %82 : vector<17x17xf32>
    %84 = arith.truncf %83 : vector<17x17xf32> to vector<17x17xbf16>
    %cst_20 = arith.constant dense<0.000000e+00> : vector<17x8xf32>
    %85 = tpu.matmul %84, %70, %cst_20 {dimension_numbers = #tpu.dot_dimension_numbers<[1], [0], [0], [1], [0, 0, 1, 1], [], []>} : vector<17x17xbf16>, vector<17x8xbf16>, vector<17x8xf32> -> vector<17x8xf32>
    %86 = tpu.concatenate %22, %43, %64, %85 in 1 : vector<17x8xf32>, vector<17x8xf32>, vector<17x8xf32>, vector<17x8xf32> -> vector<17x32xf32>
    %c0_21 = arith.constant 0 : index
    %c0_22 = arith.constant 0 : index
    %c0_23 = arith.constant 0 : index
    %87 = vector.load %arg2[%c0_21, %c0_22, %c0_23] : memref<1x17x32xf32, #tpu.memory_space<vmem>>, vector<1x17x32xf32>
    %88 = vector.shape_cast %87 : vector<1x17x32xf32> to vector<17x32xf32>
    %89 = vector.shape_cast %86 : vector<17x32xf32> to vector<1x17x32xf32>
    tpu.vector_store %arg2[%c0_21, %c0_22, %c0_23], %89 {strides = array<i32>} : memref<1x17x32xf32, #tpu.memory_space<vmem>>, vector<1x17x32xf32>,
    return
  }
  func.func @transform_0(%arg0: i32) -> (i32, i32, i32) {
    %c0_i32 = arith.constant 0 : i32
    %c0_i32_0 = arith.constant 0 : i32
    %c0_i32_1 = arith.constant 0 : i32
    return %arg0, %c0_i32, %c0_i32_0 : i32, i32, i32
  }
  func.func @transform_1(%arg0: i32) -> (i32, i32, i32) {
    %c0_i32 = arith.constant 0 : i32
    %c0_i32_0 = arith.constant 0 : i32
    %c0_i32_1 = arith.constant 0 : i32
    return %arg0, %c0_i32, %c0_i32_0 : i32, i32, i32
  }
}

module attributes {stable_mosaic.version = 11 : i64} {
  func.func @_layernorm_kernel(%arg0: i32, %arg1: memref<34x32xf32, #tpu.memory_space<vmem>>, %arg2: memref<1x32xf32, #tpu.memory_space<vmem>>, %arg3: memref<1x32xf32, #tpu.memory_space<vmem>>, %arg4: memref<34x32xf32, #tpu.memory_space<vmem>>) attributes {dimension_semantics = [#tpu.dimension_semantics<parallel>], iteration_bounds = array<i64: 1>, scalar_prefetch = 0 : i64, scratch_operands = 0 : i64, tpu.core_type = #tpu.core_type<tc>, window_params = [{transform_indices = @transform_0, window_bounds = array<i64: 34, 32>}, {pipeline_mode = #tpu.pipeline_mode<synchronous>, transform_indices = @transform_1, window_bounds = array<i64: 1, 32>}, {pipeline_mode = #tpu.pipeline_mode<synchronous>, transform_indices = @transform_2, window_bounds = array<i64: 1, 32>}, {transform_indices = @transform_3, window_bounds = array<i64: 34, 32>}]} {
    %c0 = arith.constant 0 : index
    %c0_0 = arith.constant 0 : index
    %0 = vector.load %arg1[%c0, %c0_0] : memref<34x32xf32, #tpu.memory_space<vmem>>, vector<34x32xf32>
    %cst = arith.constant dense<0.000000e+00> : vector<34xf32>
    %1 = vector.multi_reduction <add>, %0, %cst [1] : vector<34x32xf32> to vector<34xf32>
    %2 = vector.shape_cast %1 : vector<34xf32> to vector<34x1xf32>
    %cst_1 = arith.constant 3.200000e+01 : f32
    %3 = vector.broadcast %cst_1 : f32 to vector<34x1xf32>
    %4 = arith.divf %2, %3 : vector<34x1xf32>
    %5 = vector.broadcast %4 : vector<34x1xf32> to vector<34x32xf32>
    %6 = arith.subf %0, %5 : vector<34x32xf32>
    %7 = arith.mulf %6, %6 : vector<34x32xf32>
    %cst_2 = arith.constant dense<0.000000e+00> : vector<34xf32>
    %8 = vector.multi_reduction <add>, %7, %cst_2 [1] : vector<34x32xf32> to vector<34xf32>
    %9 = vector.shape_cast %8 : vector<34xf32> to vector<34x1xf32>
    %cst_3 = arith.constant 3.200000e+01 : f32
    %10 = vector.broadcast %cst_3 : f32 to vector<34x1xf32>
    %11 = arith.divf %9, %10 : vector<34x1xf32>
    %12 = vector.broadcast %4 : vector<34x1xf32> to vector<34x32xf32>
    %13 = arith.subf %0, %12 : vector<34x32xf32>
    %cst_4 = arith.constant 9.99999974E-6 : f32
    %14 = vector.broadcast %cst_4 : f32 to vector<34x1xf32>
    %15 = arith.addf %11, %14 : vector<34x1xf32>
    %16 = math.rsqrt %15 : vector<34x1xf32>
    %17 = vector.broadcast %16 : vector<34x1xf32> to vector<34x32xf32>
    %18 = arith.mulf %13, %17 : vector<34x32xf32>
    %c0_5 = arith.constant 0 : index
    %c0_6 = arith.constant 0 : index
    %19 = vector.load %arg2[%c0_5, %c0_6] : memref<1x32xf32, #tpu.memory_space<vmem>>, vector<1x32xf32>
    %20 = vector.broadcast %19 : vector<1x32xf32> to vector<34x32xf32>
    %21 = arith.mulf %18, %20 : vector<34x32xf32>
    %c0_7 = arith.constant 0 : index
    %c0_8 = arith.constant 0 : index
    %22 = vector.load %arg3[%c0_7, %c0_8] : memref<1x32xf32, #tpu.memory_space<vmem>>, vector<1x32xf32>
    %23 = vector.broadcast %22 : vector<1x32xf32> to vector<34x32xf32>
    %24 = arith.addf %21, %23 : vector<34x32xf32>
    %c0_9 = arith.constant 0 : index
    %c0_10 = arith.constant 0 : index
    %25 = vector.load %arg4[%c0_9, %c0_10] : memref<34x32xf32, #tpu.memory_space<vmem>>, vector<34x32xf32>
    tpu.vector_store %arg4[%c0_9, %c0_10], %24 {strides = array<i32>} : memref<34x32xf32, #tpu.memory_space<vmem>>, vector<34x32xf32>,
    return
  }
  func.func @transform_0(%arg0: i32) -> (i32, i32) {
    %c0_i32 = arith.constant 0 : i32
    %c0_i32_0 = arith.constant 0 : i32
    return %arg0, %c0_i32 : i32, i32
  }
  func.func @transform_1(%arg0: i32) -> (i32, i32) {
    %c0_i32 = arith.constant 0 : i32
    %c0_i32_0 = arith.constant 0 : i32
    %c0_i32_1 = arith.constant 0 : i32
    return %c0_i32, %c0_i32_0 : i32, i32
  }
  func.func @transform_2(%arg0: i32) -> (i32, i32) {
    %c0_i32 = arith.constant 0 : i32
    %c0_i32_0 = arith.constant 0 : i32
    %c0_i32_1 = arith.constant 0 : i32
    return %c0_i32, %c0_i32_0 : i32, i32
  }
  func.func @transform_3(%arg0: i32) -> (i32, i32) {
    %c0_i32 = arith.constant 0 : i32
    %c0_i32_0 = arith.constant 0 : i32
    return %arg0, %c0_i32 : i32, i32
  }
}

module attributes {stable_mosaic.version = 11 : i64} {
  func.func @_mlp_kernel(%arg0: i32, %arg1: memref<34x32xf32, #tpu.memory_space<vmem>>, %arg2: memref<1x32xf32, #tpu.memory_space<vmem>>, %arg3: memref<1x32xf32, #tpu.memory_space<vmem>>, %arg4: memref<32x128xf32, #tpu.memory_space<vmem>>, %arg5: memref<1x128xf32, #tpu.memory_space<vmem>>, %arg6: memref<128x32xf32, #tpu.memory_space<vmem>>, %arg7: memref<1x32xf32, #tpu.memory_space<vmem>>, %arg8: memref<34x32xf32, #tpu.memory_space<vmem>>) attributes {dimension_semantics = [#tpu.dimension_semantics<parallel>], iteration_bounds = array<i64: 1>, scalar_prefetch = 0 : i64, scratch_operands = 0 : i64, tpu.core_type = #tpu.core_type<tc>, window_params = [{transform_indices = @transform_0, window_bounds = array<i64: 34, 32>}, {pipeline_mode = #tpu.pipeline_mode<synchronous>, transform_indices = @transform_1, window_bounds = array<i64: 1, 32>}, {pipeline_mode = #tpu.pipeline_mode<synchronous>, transform_indices = @transform_2, window_bounds = array<i64: 1, 32>}, {pipeline_mode = #tpu.pipeline_mode<synchronous>, transform_indices = @transform_3, window_bounds = array<i64: 32, 128>}, {pipeline_mode = #tpu.pipeline_mode<synchronous>, transform_indices = @transform_4, window_bounds = array<i64: 1, 128>}, {pipeline_mode = #tpu.pipeline_mode<synchronous>, transform_indices = @transform_5, window_bounds = array<i64: 128, 32>}, {pipeline_mode = #tpu.pipeline_mode<synchronous>, transform_indices = @transform_6, window_bounds = array<i64: 1, 32>}, {transform_indices = @transform_7, window_bounds = array<i64: 34, 32>}]} {
    %c0 = arith.constant 0 : index
    %c0_0 = arith.constant 0 : index
    %0 = vector.load %arg1[%c0, %c0_0] : memref<34x32xf32, #tpu.memory_space<vmem>>, vector<34x32xf32>
    %cst = arith.constant dense<0.000000e+00> : vector<34xf32>
    %1 = vector.multi_reduction <add>, %0, %cst [1] : vector<34x32xf32> to vector<34xf32>
    %2 = vector.shape_cast %1 : vector<34xf32> to vector<34x1xf32>
    %cst_1 = arith.constant 3.200000e+01 : f32
    %3 = vector.broadcast %cst_1 : f32 to vector<34x1xf32>
    %4 = arith.divf %2, %3 : vector<34x1xf32>
    %5 = vector.broadcast %4 : vector<34x1xf32> to vector<34x32xf32>
    %6 = arith.subf %0, %5 : vector<34x32xf32>
    %7 = arith.mulf %6, %6 : vector<34x32xf32>
    %cst_2 = arith.constant dense<0.000000e+00> : vector<34xf32>
    %8 = vector.multi_reduction <add>, %7, %cst_2 [1] : vector<34x32xf32> to vector<34xf32>
    %9 = vector.shape_cast %8 : vector<34xf32> to vector<34x1xf32>
    %cst_3 = arith.constant 3.200000e+01 : f32
    %10 = vector.broadcast %cst_3 : f32 to vector<34x1xf32>
    %11 = arith.divf %9, %10 : vector<34x1xf32>
    %12 = vector.broadcast %4 : vector<34x1xf32> to vector<34x32xf32>
    %13 = arith.subf %0, %12 : vector<34x32xf32>
    %cst_4 = arith.constant 9.99999974E-6 : f32
    %14 = vector.broadcast %cst_4 : f32 to vector<34x1xf32>
    %15 = arith.addf %11, %14 : vector<34x1xf32>
    %16 = math.rsqrt %15 : vector<34x1xf32>
    %17 = vector.broadcast %16 : vector<34x1xf32> to vector<34x32xf32>
    %18 = arith.mulf %13, %17 : vector<34x32xf32>
    %c0_5 = arith.constant 0 : index
    %c0_6 = arith.constant 0 : index
    %19 = vector.load %arg2[%c0_5, %c0_6] : memref<1x32xf32, #tpu.memory_space<vmem>>, vector<1x32xf32>
    %20 = vector.broadcast %19 : vector<1x32xf32> to vector<34x32xf32>
    %21 = arith.mulf %18, %20 : vector<34x32xf32>
    %c0_7 = arith.constant 0 : index
    %c0_8 = arith.constant 0 : index
    %22 = vector.load %arg3[%c0_7, %c0_8] : memref<1x32xf32, #tpu.memory_space<vmem>>, vector<1x32xf32>
    %23 = vector.broadcast %22 : vector<1x32xf32> to vector<34x32xf32>
    %24 = arith.addf %21, %23 : vector<34x32xf32>
    %25 = arith.truncf %24 : vector<34x32xf32> to vector<34x32xbf16>
    %c0_9 = arith.constant 0 : index
    %c0_10 = arith.constant 0 : index
    %26 = vector.load %arg4[%c0_9, %c0_10] : memref<32x128xf32, #tpu.memory_space<vmem>>, vector<32x128xf32>
    %27 = arith.truncf %26 : vector<32x128xf32> to vector<32x128xbf16>
    %cst_11 = arith.constant dense<0.000000e+00> : vector<34x128xf32>
    %28 = tpu.matmul %25, %27, %cst_11 {dimension_numbers = #tpu.dot_dimension_numbers<[1], [0], [0], [1], [0, 0, 1, 1], [], []>} : vector<34x32xbf16>, vector<32x128xbf16>, vector<34x128xf32> -> vector<34x128xf32>
    %c0_12 = arith.constant 0 : index
    %c0_13 = arith.constant 0 : index
    %29 = vector.load %arg5[%c0_12, %c0_13] : memref<1x128xf32, #tpu.memory_space<vmem>>, vector<1x128xf32>
    %30 = vector.broadcast %29 : vector<1x128xf32> to vector<34x128xf32>
    %31 = arith.addf %28, %30 : vector<34x128xf32>
    %32 = arith.mulf %31, %31 : vector<34x128xf32>
    %33 = arith.mulf %31, %32 : vector<34x128xf32>
    %cst_14 = arith.constant 4.471500e-02 : f32
    %34 = vector.broadcast %cst_14 : f32 to vector<34x128xf32>
    %35 = arith.mulf %34, %33 : vector<34x128xf32>
    %36 = arith.addf %31, %35 : vector<34x128xf32>
    %cst_15 = arith.constant 0.797884583 : f32
    %37 = vector.broadcast %cst_15 : f32 to vector<34x128xf32>
    %38 = arith.mulf %37, %36 : vector<34x128xf32>
    %39 = math.tanh %38 : vector<34x128xf32>
    %cst_16 = arith.constant 1.000000e+00 : f32
    %40 = vector.broadcast %cst_16 : f32 to vector<34x128xf32>
    %41 = arith.addf %40, %39 : vector<34x128xf32>
    %cst_17 = arith.constant 5.000000e-01 : f32
    %42 = vector.broadcast %cst_17 : f32 to vector<34x128xf32>
    %43 = arith.mulf %42, %41 : vector<34x128xf32>
    %44 = arith.mulf %31, %43 : vector<34x128xf32>
    %45 = arith.truncf %44 : vector<34x128xf32> to vector<34x128xbf16>
    %c0_18 = arith.constant 0 : index
    %c0_19 = arith.constant 0 : index
    %46 = vector.load %arg6[%c0_18, %c0_19] : memref<128x32xf32, #tpu.memory_space<vmem>>, vector<128x32xf32>
    %47 = arith.truncf %46 : vector<128x32xf32> to vector<128x32xbf16>
    %cst_20 = arith.constant dense<0.000000e+00> : vector<34x32xf32>
    %48 = tpu.matmul %45, %47, %cst_20 {dimension_numbers = #tpu.dot_dimension_numbers<[1], [0], [0], [1], [0, 0, 1, 1], [], []>} : vector<34x128xbf16>, vector<128x32xbf16>, vector<34x32xf32> -> vector<34x32xf32>
    %c0_21 = arith.constant 0 : index
    %c0_22 = arith.constant 0 : index
    %49 = vector.load %arg7[%c0_21, %c0_22] : memref<1x32xf32, #tpu.memory_space<vmem>>, vector<1x32xf32>
    %50 = vector.broadcast %49 : vector<1x32xf32> to vector<34x32xf32>
    %51 = arith.addf %48, %50 : vector<34x32xf32>
    %52 = arith.addf %0, %51 : vector<34x32xf32>
    %c0_23 = arith.constant 0 : index
    %c0_24 = arith.constant 0 : index
    %53 = vector.load %arg8[%c0_23, %c0_24] : memref<34x32xf32, #tpu.memory_space<vmem>>, vector<34x32xf32>
    tpu.vector_store %arg8[%c0_23, %c0_24], %52 {strides = array<i32>} : memref<34x32xf32, #tpu.memory_space<vmem>>, vector<34x32xf32>,
    return
  }
  func.func @transform_0(%arg0: i32) -> (i32, i32) {
    %c0_i32 = arith.constant 0 : i32
    %c0_i32_0 = arith.constant 0 : i32
    return %arg0, %c0_i32 : i32, i32
  }
  func.func @transform_1(%arg0: i32) -> (i32, i32) {
    %c0_i32 = arith.constant 0 : i32
    %c0_i32_0 = arith.constant 0 : i32
    %c0_i32_1 = arith.constant 0 : i32
    return %c0_i32, %c0_i32_0 : i32, i32
  }
  func.func @transform_2(%arg0: i32) -> (i32, i32) {
    %c0_i32 = arith.constant 0 : i32
    %c0_i32_0 = arith.constant 0 : i32
    %c0_i32_1 = arith.constant 0 : i32
    return %c0_i32, %c0_i32_0 : i32, i32
  }
  func.func @transform_3(%arg0: i32) -> (i32, i32) {
    %c0_i32 = arith.constant 0 : i32
    %c0_i32_0 = arith.constant 0 : i32
    %c0_i32_1 = arith.constant 0 : i32
    return %c0_i32, %c0_i32_0 : i32, i32
  }
  func.func @transform_4(%arg0: i32) -> (i32, i32) {
    %c0_i32 = arith.constant 0 : i32
    %c0_i32_0 = arith.constant 0 : i32
    %c0_i32_1 = arith.constant 0 : i32
    return %c0_i32, %c0_i32_0 : i32, i32
  }
  func.func @transform_5(%arg0: i32) -> (i32, i32) {
    %c0_i32 = arith.constant 0 : i32
    %c0_i32_0 = arith.constant 0 : i32
    %c0_i32_1 = arith.constant 0 : i32
    return %c0_i32, %c0_i32_0 : i32, i32
  }
  func.func @transform_6(%arg0: i32) -> (i32, i32) {
    %c0_i32 = arith.constant 0 : i32
    %c0_i32_0 = arith.constant 0 : i32
    %c0_i32_1 = arith.constant 0 : i32
    return %c0_i32, %c0_i32_0 : i32, i32
  }
  func.func @transform_7(%arg0: i32) -> (i32, i32) {
    %c0_i32 = arith.constant 0 : i32
    %c0_i32_0 = arith.constant 0 : i32
    return %arg0, %c0_i32 : i32, i32
  }
}

module attributes {stable_mosaic.version = 11 : i64} {
  func.func @_linear_kernel(%arg0: i32, %arg1: i32, %arg2: memref<32x32xf32, #tpu.memory_space<vmem>>, %arg3: memref<32x48xf32, #tpu.memory_space<vmem>>, %arg4: memref<1x48xf32, #tpu.memory_space<vmem>>, %arg5: memref<32x48xf32, #tpu.memory_space<vmem>>) attributes {dimension_semantics = [#tpu.dimension_semantics<parallel>, #tpu.dimension_semantics<parallel>], iteration_bounds = array<i64: 1, 1>, scalar_prefetch = 0 : i64, scratch_operands = 0 : i64, tpu.core_type = #tpu.core_type<tc>, window_params = [{transform_indices = @transform_0, window_bounds = array<i64: 32, 32>}, {transform_indices = @transform_1, window_bounds = array<i64: 32, 48>}, {transform_indices = @transform_2, window_bounds = array<i64: 1, 48>}, {transform_indices = @transform_3, window_bounds = array<i64: 32, 48>}]} {
    %c0 = arith.constant 0 : index
    %c0_0 = arith.constant 0 : index
    %0 = vector.load %arg2[%c0, %c0_0] : memref<32x32xf32, #tpu.memory_space<vmem>>, vector<32x32xf32>
    %1 = arith.truncf %0 : vector<32x32xf32> to vector<32x32xbf16>
    %c0_1 = arith.constant 0 : index
    %c0_2 = arith.constant 0 : index
    %2 = vector.load %arg3[%c0_1, %c0_2] : memref<32x48xf32, #tpu.memory_space<vmem>>, vector<32x48xf32>
    %3 = arith.truncf %2 : vector<32x48xf32> to vector<32x48xbf16>
    %cst = arith.constant dense<0.000000e+00> : vector<32x48xf32>
    %4 = tpu.matmul %1, %3, %cst {dimension_numbers = #tpu.dot_dimension_numbers<[1], [0], [0], [1], [0, 0, 1, 1], [], []>} : vector<32x32xbf16>, vector<32x48xbf16>, vector<32x48xf32> -> vector<32x48xf32>
    %c0_3 = arith.constant 0 : index
    %c0_4 = arith.constant 0 : index
    %5 = vector.load %arg4[%c0_3, %c0_4] : memref<1x48xf32, #tpu.memory_space<vmem>>, vector<1x48xf32>
    %6 = vector.broadcast %5 : vector<1x48xf32> to vector<32x48xf32>
    %7 = arith.addf %4, %6 : vector<32x48xf32>
    %8 = arith.negf %7 : vector<32x48xf32>
    %9 = math.exp %8 : vector<32x48xf32>
    %cst_5 = arith.constant 1.000000e+00 : f32
    %10 = vector.broadcast %cst_5 : f32 to vector<32x48xf32>
    %11 = arith.addf %10, %9 : vector<32x48xf32>
    %12 = arith.divf %10, %11 : vector<32x48xf32>
    %c0_6 = arith.constant 0 : index
    %c0_7 = arith.constant 0 : index
    %13 = vector.load %arg5[%c0_6, %c0_7] : memref<32x48xf32, #tpu.memory_space<vmem>>, vector<32x48xf32>
    tpu.vector_store %arg5[%c0_6, %c0_7], %12 {strides = array<i32>} : memref<32x48xf32, #tpu.memory_space<vmem>>, vector<32x48xf32>,
    return
  }
  func.func @transform_0(%arg0: i32, %arg1: i32) -> (i32, i32) {
    %c0_i32 = arith.constant 0 : i32
    %c0_i32_0 = arith.constant 0 : i32
    return %arg0, %c0_i32 : i32, i32
  }
  func.func @transform_1(%arg0: i32, %arg1: i32) -> (i32, i32) {
    %c0_i32 = arith.constant 0 : i32
    %c0_i32_0 = arith.constant 0 : i32
    return %c0_i32, %arg1 : i32, i32
  }
  func.func @transform_2(%arg0: i32, %arg1: i32) -> (i32, i32) {
    %c0_i32 = arith.constant 0 : i32
    %c0_i32_0 = arith.constant 0 : i32
    return %c0_i32, %arg1 : i32, i32
  }
  func.func @transform_3(%arg0: i32, %arg1: i32) -> (i32, i32) {
    %c0_i32 = arith.constant 0 : i32
    return %arg0, %arg1 : i32, i32
  }
}

</mosaic_0001>

<bundles_post_ra>
// kernel: _lambda_.19
= control target key start
LH: loop header
LB: loop body
LE: loop exit
PB: predicated region body
PF: predicated region fallthrough
CT: control target
= control target key end

     0   :  { %vm37_vm0 = vcmask 392192   ;;  %vm93_vm1 = vcmask 261120   ;;  %s185_s1 = inlined_call_operand.vmem [shape: f32[48,32], index: 1, kind: input, shape index: {}]   ;;  %s186_s0 = inlined_call_operand.vmem [shape: f32[32,48], index: 0, kind: input, shape index: {}]   ;;  %s187_s2 = inlined_call_operand.vmem [shape: f32[1,32], index: 2, kind: input, shape index: {}]   ;;  %s188_s3 = inlined_call_operand.vmem [shape: f32[32,32], index: 3, kind: output, shape index: {}]  }
   0x1   :  { %v21_v0 = vld [vmem:[%s185_s1] sm:$0xff]  ;;  %v22_v1 = vld [vmem:[%s185_s1 + $0x8] sm:$0xff]  ;;  %v23_v2 = vld [vmem:[%s185_s1 + $0x10] sm:$0xff] }
   0x2   :  { %v27_v3 = vpack.c.bf16 %v22_v1, %v21_v0  ;;  %v24_v4 = vld [vmem:[%s185_s1 + $0x18] sm:$0xff]  ;;  %v25_v5 = vld [vmem:[%s185_s1 + $0x20] sm:$0xff]  ;;  %v26_v7 = vld [vmem:[%s185_s1 + $0x28] sm:$0xff] }
   0x3   :  { %v28_v6 = vpack.c.bf16 %v24_v4, %v23_v2  ;;  %v15_v8 = vld [vmem:[%s186_s0] sm:$0xff]  ;;  %v16_v9 = vld [vmem:[%s186_s0 + $0x8] sm:$0xff]  ;;  %v29_v11 = vpack.c.bf16 %v26_v7, %v25_v5  ;;  %v17_v12 = vld [vmem:[%s186_s0 + $0x10] sm:$0xff] }
   0x4   :  { %110 = vmatprep.subr.bf16.mxu0 %v27_v3  ;;  %v19_v10 = vpack.c.bf16 %v16_v9, %v15_v8  ;;  %v18_v13 = vld [vmem:[%s186_s0 + $0x18] sm:$0xff]  ;;  %v102_v15 = vld [vmem:[%s187_s2] ss:$0 sm:$0xff] }
   0x5   :  { %111 = vmatpush3.bf16.msra.mxu0 %v27_v3  ;;  %v20_v14 = vpack.c.bf16 %v18_v13, %v17_v12 }
   0x6   :  { %112 = vmatprep.subr.bf16.mxu0 %v28_v6  ;;  %116 = vmatprep.mubr.msk.bf16.mxu0 %vm37_vm0, %v19_v10 }
   0x9   :  { %113 = vmatpush3.bf16.msra.mxu0 %v28_v6 }
   0xa   :  { %114 = vmatprep.subr.bf16.mxu0 %v29_v11 }
   0xd   :  { %115 = vmatpush3.bf16.msra.mxu0 %v29_v11 }
  0x10   :  { %117 = vmatmul.mubr.msk.bf16.vlgmr.msra.gmra.mrb[0].mxu0 %vm37_vm0, %v20_v14 }
  0xe3   :  { %v118_v16 = vpop.f32.mrb[0].mxu0 }
  0xe4   :  { %v87_v17 = vadd.f32 %v118_v16, %v102_v15  ;;  %v78_v18 = vpop.f32.mrb[1].mxu0 }
  0xe5   :  { %v79_v19 = vadd.f32 %v102_v15, %v78_v18  ;;  %v119_v20 = vpop.f32.mrb[2].mxu0 }
  0xe6   :  { %96 = vst.msk [vmem:[%s188_s3 + $0x10] sm:$0xff] %vm93_vm1, %v87_v17  ;;  %v90_v21 = vadd.f32 %v119_v20, %v102_v15  ;;  %v81_v22 = vpop.f32.mrb[3].mxu0 }
  0xe7   :  { %94 = vst.msk [vmem:[%s188_s3] sm:$0xff] %vm93_vm1, %v79_v19  ;;  %v82_v23 = vadd.f32 %v102_v15, %v81_v22 }
  0xe8   :  { %97 = vst.msk [vmem:[%s188_s3 + $0x18] sm:$0xff] %vm93_vm1, %v90_v21 }
  0xe9   :  { %95 = vst.msk [vmem:[%s188_s3 + $0x8] sm:$0xff] %vm93_vm1, %v82_v23 }

// kernel: _lambda_.20
= control target key start
LH: loop header
LB: loop body
LE: loop exit
PB: predicated region body
PF: predicated region fallthrough
CT: control target
= control target key end

     0   :  { %vm26_vm0 = vcmask 261120   ;;  %vm39_vm1 = vcmask 254976   ;;  %v253_v38 = vmov 0.0   ;;  %vm254_vm2 = vmmov 0   ;;  %s381_s0 = inlined_call_operand.vmem [shape: f32[34,32], index: 0, kind: input, shape index: {}]   ;;  %s382_s3 = inlined_call_operand.vmem [shape: f32[32,96], index: 3, kind: input, shape index: {}]   ;;  %s383_s1 = inlined_call_operand.vmem [shape: f32[1,32], index: 1, kind: input, shape index: {}]   ;;  %s384_s2 = inlined_call_operand.vmem [shape: f32[1,32], index: 2, kind: input, shape index: {}]   ;;  %s385_s4 = inlined_call_operand.vmem [shape: f32[1,96], index: 4, kind: input, shape index: {}]   ;;  %s386_s5 = inlined_call_operand.vmem [shape: f32[34,96], index: 5, kind: output, shape index: {}]  }
   0x1   :  { %v23_v0 = vld [vmem:[%s381_s0 + $0x10] sm:$0xff]  ;;  %v24_v1 = vld [vmem:[%s381_s0 + $0x18] sm:$0xff]  ;;  %v21_v2 = vld [vmem:[%s381_s0] sm:$0xff]  ;;  %237 = vmatprep.subr.bf16.mxu1 %v253_v38  ;;  %221 = vmatprep.subr.bf16.mxu0 %v253_v38  ;;  %vm199_vm3 = vcmask 785408   ;;  %vm204_vm4 = vcmask 779264  }
   0x2   :  { %v33_v3 = vsel %vm26_vm0, %v23_v0, 0.0  ;;  %v27_v4 = vsel %vm26_vm0, %v21_v2, 0.0  ;;  %v22_v5 = vld [vmem:[%s381_s0 + $0x8] sm:$0xff]  ;;  %v36_v6 = vsel %vm26_vm0, %v24_v1, 0.0  ;;  %v25_v8 = vld [vmem:[%s381_s0 + $0x20] sm:$0x3]  ;;  %229 = vmatprep.mubr.msk.bf16.mxu1 %vm254_vm2, %v253_v38  ;;  %225 = vmatprep.mubr.msk.bf16.mxu0 %vm254_vm2, %v253_v38 }
   0x3   :  { %34 = vadd.xlane.f32.xlu0 %v33_v3  ;;  %28 = vadd.xlane.f32.xlu1 %v27_v4  ;;  %v30_v7 = vsel %vm26_vm0, %v22_v5, 0.0  ;;  %v40_v9 = vsel %vm39_vm1, %v25_v8, 0.0  ;;  %v121_v35 = vld [vmem:[%s382_s3] sm:$0xff]  ;;  %v122_v36 = vld [vmem:[%s382_s3 + $0x8] sm:$0xff]  ;;  %v123_v39 = vld [vmem:[%s382_s3 + $0x10] sm:$0xff] }
   0x4   :  { %v125_v37 = vpack.c.bf16 %v122_v36, %v121_v35  ;;  %v124_v40 = vld [vmem:[%s382_s3 + $0x18] sm:$0xff]  ;;  %v210_v59 = vld [vmem:[%s383_s1] ss:$0 sm:$0xff] }
   0x5   :  { %v126_v41 = vpack.c.bf16 %v124_v40, %v123_v39 }
   0x6   :  { %239 = vmatpush3.bf16.msra.mxu1 %v125_v37  ;;  %222 = vmatpush3.bf16.msra.mxu0 %v125_v37 }
   0x7   :  { %37 = vadd.xlane.f32.xlu0 %v36_v6  ;;  %31 = vadd.xlane.f32.xlu1 %v30_v7 }
   0x8   :  { %238 = vmatprep.subr.bf16.mxu1 %v253_v38  ;;  %223 = vmatprep.subr.bf16.mxu0 %v253_v38 }
   0xa   :  { %240 = vmatpush3.bf16.msra.mxu1 %v126_v41  ;;  %224 = vmatpush3.bf16.msra.mxu0 %v126_v41 }
   0xb   :  { %41 = vadd.xlane.f32.xlu0 %v40_v9 }
  0x90   :  { %v35_v10 = vpop.xlane.xlu0 %34  ;;  %v29_v11 = vpop.xlane.xlu1 %28 }
  0x91   :  { %v46_v12 = vmul.f32 0.03125, %v35_v10  ;;  %v44_v13 = vmul.f32 0.03125, %v29_v11 }
  0x93   :  { %v305_v14 = vsub.f32 %v23_v0, %v46_v12  ;;  %v307_v15 = vsub.f32 %v21_v2, %v44_v13 }
  0x94   :  { %v38_v16 = vpop.xlane.xlu0 %37  ;;  %v32_v17 = vpop.xlane.xlu1 %31 }
  0x95   :  { %v47_v18 = vmul.f32 0.03125, %v38_v16  ;;  %v56_v19 = vmul.f32 %v305_v14, %v305_v14  ;;  %v45_v20 = vmul.f32 0.03125, %v32_v17  ;;  %v54_v21 = vmul.f32 %v307_v15, %v307_v15 }
  0x97   :  { %v313_v22 = vsub.f32 %v24_v1, %v47_v18  ;;  %v65_v23 = vsel %vm26_vm0, %v56_v19, 0.0  ;;  %v316_v24 = vsub.f32 %v22_v5, %v45_v20  ;;  %v59_v28 = vsel %vm26_vm0, %v54_v21, 0.0  ;;  %v211_v1 = vld [vmem:[%s384_s2] ss:$0 sm:$0xff] }
  0x98   :  { %v42_v25 = vpop.xlane.xlu0 %41  ;;  %66 = vadd.xlane.f32.xlu1 %v65_v23  ;;  %v212_v18 = vld [vmem:[%s385_s4] ss:$0 sm:$0xff] }
  0x99   :  { %v48_v26 = vmul.f32 0.03125, %v42_v25  ;;  %v57_v27 = vmul.f32 %v313_v22, %v313_v22  ;;  %v55_v29 = vmul.f32 %v316_v24, %v316_v24 }
  0x9b   :  { %v323_v30 = vsub.f32 %v25_v8, %v48_v26  ;;  %v68_v31 = vsel %vm26_vm0, %v57_v27, 0.0  ;;  %v62_v33 = vsel %vm26_vm0, %v55_v29, 0.0 }
  0x9c   :  { %69 = vadd.xlane.f32.xlu0 %v68_v31  ;;  %60 = vadd.xlane.f32.xlu1 %v59_v28 }
  0x9d   :  { %v58_v32 = vmul.f32 %v323_v30, %v323_v30 }
  0x9f   :  { %v71_v34 = vsel %vm39_vm1, %v58_v32, 0.0 }
  0xa0   :  { %72 = vadd.xlane.f32.xlu1 %v71_v34  ;;  %63 = vadd.xlane.f32.xlu0 %v62_v33 }
 0x125   :  { %v67_v42 = vpop.xlane.xlu1 %66 }
 0x126   :  { %v76_v43 = vmul.f32 0.03125, %v67_v42 }
 0x128   :  { %v81_v44 = vadd.f32 1e-05, %v76_v43 }
 0x129   :  { %v70_v45 = vpop.xlane.xlu0 %69  ;;  %v61_v46 = vpop.xlane.xlu1 %60 }
 0x12a   :  { %243 = vrsqrt.f32 %v81_v44  ;;  %v77_v47 = vmul.f32 0.03125, %v70_v45  ;;  %v74_v48 = vmul.f32 0.03125, %v61_v46 }
 0x12c   :  { %v82_v49 = vadd.f32 1e-05, %v77_v47  ;;  %v79_v50 = vadd.f32 1e-05, %v74_v48 }
 0x12d   :  { %v64_v51 = vpop.xlane.xlu0 %63  ;;  %v73_v52 = vpop.xlane.xlu1 %72 }
 0x12e   :  { %245 = vrsqrt.f32 %v82_v49  ;;  %v75_v53 = vmul.f32 0.03125, %v64_v51  ;;  %v78_v54 = vmul.f32 0.03125, %v73_v52 }
 0x12f   :  { %247 = vrsqrt.f32 %v79_v50 }
 0x130   :  { %v80_v55 = vadd.f32 1e-05, %v75_v53  ;;  %v83_v56 = vadd.f32 1e-05, %v78_v54 }
 0x132   :  { %249 = vrsqrt.f32 %v80_v55 }
 0x133   :  { %251 = vrsqrt.f32 %v83_v56 }
 0x134   :  { %v244_v57 = vpop.eup %243 }
 0x135   :  { %v91_v58 = vmul.f32 %v244_v57, %v305_v14 }
 0x137   :  { %v103_v63 = vmul.f32 %v210_v59, %v91_v58 }
 0x138   :  { %v246_v60 = vpop.eup %245 }
 0x139   :  { %v248_v61 = vpop.eup %247  ;;  %v92_v62 = vmul.f32 %v246_v60, %v313_v22  ;;  %v115_v6 = vadd.f32 %v211_v1, %v103_v63 }
 0x13a   :  { %v89_v0 = vmul.f32 %v248_v61, %v307_v15 }
 0x13b   :  { %v104_v2 = vmul.f32 %v210_v59, %v92_v62 }
 0x13c   :  { %v250_v3 = vpop.eup %249  ;;  %v101_v8 = vmul.f32 %v210_v59, %v89_v0 }
 0x13d   :  { %v252_v4 = vpop.eup %251  ;;  %v90_v5 = vmul.f32 %v250_v3, %v316_v24  ;;  %v116_v7 = vadd.f32 %v211_v1, %v104_v2 }
 0x13e   :  { %v93_v9 = vmul.f32 %v252_v4, %v323_v30  ;;  %v113_v13 = vadd.f32 %v211_v1, %v101_v8 }
 0x13f   :  { %v119_v10 = vpack.c.bf16 %v116_v7, %v115_v6  ;;  %v102_v11 = vmul.f32 %v210_v59, %v90_v5 }
 0x140   :  { %v105_v12 = vmul.f32 %v210_v59, %v93_v9 }
 0x141   :  { %230 = vmatmul.mubr.msk.bf16.vlgmr.msra.gmra.mrb[0].mxu1 %vm26_vm0, %v119_v10  ;;  %v114_v14 = vadd.f32 %v211_v1, %v102_v11 }
 0x142   :  { %233 = vmatprep.mubr.msk.bf16.mxu1 %vm254_vm2, %v253_v38  ;;  %v117_v16 = vadd.f32 %v211_v1, %v105_v12 }
 0x143   :  { %v118_v15 = vpack.c.bf16 %v114_v14, %v113_v13 }
 0x144   :  { %v120_v17 = vpack.c.bf16 %v117_v16, %v117_v16 }
 0x145   :  { %226 = vmatmul.mubr.msk.bf16.vlgmr.msra.gmra.mrb[0].mxu0 %vm26_vm0, %v118_v15 }
 0x149   :  { %234 = vmatmul.mubr.msk.bf16.gmra.mrb[4].mxu1 %vm26_vm0, %v120_v17 }
 0x214   :  { %v185_v19 = vpop.f32.mrb[0].mxu1 }
 0x215   :  { %v186_v20 = vadd.f32 %v212_v18, %v185_v19  ;;  %v231_v21 = vpop.f32.mrb[1].mxu1 }
 0x216   :  { %v188_v22 = vpop.f32.mrb[2].mxu1 }
 0x217   :  { %202 = vst.msk [vmem:[%s386_s5 + $0x10] sm:$0xff] %vm199_vm3, %v186_v20  ;;  %v189_v23 = vadd.f32 %v212_v18, %v188_v22  ;;  %v232_v24 = vpop.f32.mrb[3].mxu1 }
 0x218   :  { %v177_v25 = vpop.f32.mrb[0].mxu0 }
 0x219   :  { %203 = vst.msk [vmem:[%s386_s5 + $0x18] sm:$0xff] %vm199_vm3, %v189_v23  ;;  %v178_v26 = vadd.f32 %v212_v18, %v177_v25  ;;  %v227_v27 = vpop.f32.mrb[1].mxu0 }
 0x21a   :  { %v180_v28 = vpop.f32.mrb[2].mxu0 }
 0x21b   :  { %200 = vst.msk [vmem:[%s386_s5] sm:$0xff] %vm199_vm3, %v178_v26  ;;  %v181_v29 = vadd.f32 %v212_v18, %v180_v28  ;;  %v228_v30 = vpop.f32.mrb[3].mxu0 }
 0x21c   :  { %v193_v31 = vpop.f32.mrb[4].mxu1 }
 0x21d   :  { %201 = vst.msk [vmem:[%s386_s5 + $0x8] sm:$0xff] %vm199_vm3, %v181_v29  ;;  %v194_v32 = vadd.f32 %v212_v18, %v193_v31  ;;  %v235_v33 = vpop.f32.mrb[5].mxu1 }
 0x21e   :  { %v196_v34 = vpop.f32.mrb[6].mxu1 }
 0x21f   :  { %205 = vst.msk [vmem:[%s386_s5 + $0x20] sm:$0x3] %vm204_vm4, %v194_v32  ;;  %v236_v35 = vpop.f32.mrb[7].mxu1 }

// kernel: _lambda_.22
= control target key start
LH: loop header
LB: loop body
LE: loop exit
PB: predicated region body
PF: predicated region fallthrough
CT: control target
= control target key end

     0   :  { %v156_v0 = vmov 0.0   ;;  %vm157_vm0 = vmmov 0   ;;  %vm39_vm1 = vcmask 261120   ;;  %vm119_vm2 = vcmask 254976   ;;  %s253_s1 = inlined_call_operand.vmem [shape: f32[32,32], index: 1, kind: input, shape index: {}]   ;;  %s254_s0 = inlined_call_operand.vmem [shape: f32[34,32], index: 0, kind: input, shape index: {}]   ;;  %s255_s2 = inlined_call_operand.vmem [shape: f32[1,32], index: 2, kind: input, shape index: {}]   ;;  %s256_s3 = inlined_call_operand.vmem [shape: f32[34,32], index: 3, kind: input, shape index: {}]   ;;  %s257_s4 = inlined_call_operand.vmem [shape: f32[34,32], index: 4, kind: output, shape index: {}]  }
   0x1   :  { %150 = vmatprep.subr.bf16.mxu1 %v156_v0  ;;  %v26_v1 = vld [vmem:[%s253_s1] sm:$0xff]  ;;  %v27_v2 = vld [vmem:[%s253_s1 + $0x8] sm:$0xff]  ;;  %134 = vmatprep.subr.bf16.mxu0 %v156_v0  ;;  %v28_v3 = vld [vmem:[%s253_s1 + $0x10] sm:$0xff] }
   0x2   :  { %v30_v4 = vpack.c.bf16 %v27_v2, %v26_v1  ;;  %v29_v5 = vld [vmem:[%s253_s1 + $0x18] sm:$0xff]  ;;  %142 = vmatprep.mubr.msk.bf16.mxu1 %vm157_vm0, %v156_v0  ;;  %138 = vmatprep.mubr.msk.bf16.mxu0 %vm157_vm0, %v156_v0  ;;  %v20_v6 = vld [vmem:[%s254_s0 + $0x10] sm:$0xff]  ;;  %v18_v9 = vld [vmem:[%s254_s0] sm:$0xff] }
   0x3   :  { %v31_v7 = vpack.c.bf16 %v29_v5, %v28_v3  ;;  %v21_v8 = vld [vmem:[%s254_s0 + $0x18] sm:$0xff]  ;;  %v19_v10 = vld [vmem:[%s254_s0 + $0x8] sm:$0xff]  ;;  %v22_v13 = vld [vmem:[%s254_s0 + $0x20] sm:$0x3] }
   0x4   :  { %152 = vmatpush3.bf16.msra.mxu1 %v30_v4  ;;  %135 = vmatpush3.bf16.msra.mxu0 %v30_v4  ;;  %v24_v11 = vpack.c.bf16 %v21_v8, %v20_v6  ;;  %v23_v12 = vpack.c.bf16 %v19_v10, %v18_v9  ;;  %v25_v14 = vpack.c.bf16 %v22_v13, %v22_v13  ;;  %v125_v15 = vld [vmem:[%s255_s2] ss:$0 sm:$0xff]  ;;  %v107_v17 = vld [vmem:[%s256_s3 + $0x10] sm:$0xff]  ;;  %v108_v25 = vld [vmem:[%s256_s3 + $0x18] sm:$0xff] }
   0x5   :  { %151 = vmatprep.subr.bf16.mxu1 %v156_v0  ;;  %136 = vmatprep.subr.bf16.mxu0 %v156_v0  ;;  %v105_v19 = vld [vmem:[%s256_s3] sm:$0xff]  ;;  %v106_v27 = vld [vmem:[%s256_s3 + $0x8] sm:$0xff] }
   0x6   :  { %v109_v37 = vld [vmem:[%s256_s3 + $0x20] sm:$0x3] }
   0x8   :  { %153 = vmatpush3.bf16.msra.mxu1 %v31_v7  ;;  %137 = vmatpush3.bf16.msra.mxu0 %v31_v7 }
   0xb   :  { %143 = vmatmul.mubr.msk.bf16.vlgmr.msra.gmra.mrb[0].mxu1 %vm39_vm1, %v24_v11  ;;  %139 = vmatmul.mubr.msk.bf16.vlgmr.msra.gmra.mrb[0].mxu0 %vm39_vm1, %v23_v12 }
   0xc   :  { %146 = vmatprep.mubr.msk.bf16.mxu1 %vm157_vm0, %v156_v0 }
  0x13   :  { %147 = vmatmul.mubr.msk.bf16.gmra.mrb[4].mxu1 %vm39_vm1, %v25_v14 }
  0xde   :  { %v91_v16 = vpop.f32.mrb[0].mxu1  ;;  %v83_v18 = vpop.f32.mrb[0].mxu0 }
  0xdf   :  { %v92_v20 = vadd.f32 %v125_v15, %v91_v16  ;;  %v144_v21 = vpop.f32.mrb[1].mxu1  ;;  %v84_v22 = vadd.f32 %v125_v15, %v83_v18  ;;  %v140_v23 = vpop.f32.mrb[1].mxu0 }
  0xe0   :  { %v94_v24 = vpop.f32.mrb[2].mxu1  ;;  %v86_v26 = vpop.f32.mrb[2].mxu0 }
  0xe1   :  { %v112_v28 = vadd.f32 %v107_v17, %v92_v20  ;;  %v95_v29 = vadd.f32 %v125_v15, %v94_v24  ;;  %v110_v30 = vadd.f32 %v105_v19, %v84_v22  ;;  %v145_v31 = vpop.f32.mrb[3].mxu1  ;;  %v87_v32 = vadd.f32 %v125_v15, %v86_v26  ;;  %v141_v33 = vpop.f32.mrb[3].mxu0 }
  0xe3   :  { %117 = vst.msk [vmem:[%s257_s4 + $0x10] sm:$0xff] %vm39_vm1, %v112_v28  ;;  %v113_v34 = vadd.f32 %v108_v25, %v95_v29  ;;  %115 = vst.msk [vmem:[%s257_s4] sm:$0xff] %vm39_vm1, %v110_v30  ;;  %v111_v35 = vadd.f32 %v106_v27, %v87_v32 }
  0xe5   :  { %118 = vst.msk [vmem:[%s257_s4 + $0x18] sm:$0xff] %vm39_vm1, %v113_v34  ;;  %116 = vst.msk [vmem:[%s257_s4 + $0x8] sm:$0xff] %vm39_vm1, %v111_v35 }
  0xe6   :  { %v99_v36 = vpop.f32.mrb[4].mxu1 }
  0xe7   :  { %v100_v38 = vadd.f32 %v125_v15, %v99_v36  ;;  %v148_v39 = vpop.f32.mrb[5].mxu1 }
  0xe8   :  { %v102_v40 = vpop.f32.mrb[6].mxu1 }
  0xe9   :  { %v114_v41 = vadd.f32 %v109_v37, %v100_v38  ;;  %v149_v42 = vpop.f32.mrb[7].mxu1 }
  0xeb   :  { %120 = vst.msk [vmem:[%s257_s4 + $0x20] sm:$0x3] %vm119_vm2, %v114_v41 }

// kernel: _lambda_.21
= control target key start
LH: loop header
LB: loop body
LE: loop exit
PB: predicated region body
PF: predicated region fallthrough
CT: control target
= control target key end

     0   :  { %s1140_s6 = smov 0   ;;  %s1285_s0 = inlined_call_operand.vmem [shape: f32[2,17,96], index: 0, kind: input, shape index: {}]   ;;  %s1286_s1 = inlined_call_operand.vmem [shape: f32[2,17,32], index: 1, kind: output, shape index: {}]  }
   0x1 LB: > { %s906_s7 = sadd.s32 4294967295, %s1113_s6   ;;  %p910_p0 = scmp.ge.s32.totalorder %s1113_s6, 1  ;;  %s1113_s6 = sphi %s1140_s6, %s11_s6  }
   0x2   : > { %p87_p1 = scmp.lt.s32.totalorder %s1113_s6, 3 }
   0x4   : > { %p88_p2 = pnand %p910_p0, %p87_p1 }
   0x5   : > { %p107_p3 = scmp.lt.s32.totalorder (!%p88_p2), %s906_s7, 1  ;;  %vm129_vm0 = vcmask (!%p88_p2), 64512   ;;  %s1115_s12 = smov (!%p88_p2), 96   ;;  %vm200_vm1 = vcmask (!%p88_p2), 131072   ;;  %vm193_vm2 = vcmask (!%p88_p2), 138240   ;;  %vm241_vm3 = vcmask (!%p88_p2), 1040384  }
   0x6   : > { %91 = sbr.rel (%p88_p2) target bundleno = 2692 (0xa84), region = 24  ;;  %s1116_s13 = smov (!%p88_p2), 64   ;;  %v1119_v38 = vmov (!%p88_p2), 0   ;;  %vm838_vm4 = vcmask (!%p88_p2), 130048   ;;  %vm842_vm5 = vcmask (!%p88_p2), 195584   ;;  %vm846_vm6 = vcmask (!%p88_p2), 261120  }
   0x7   : > { %s1117_s14 = smov (!%p88_p2), 88   ;;  %s1118_s15 = smov (!%p88_p2), 120   ;;  %v1182_v39 = vsel (!%p88_p2), %vm241_vm3, 65535, %v1119_v38  ;;  %vm849_vm7 = vcmask (!%p88_p2), 253952  }
   0x8   : > { %s1120_s16 = smov (!%p88_p2), 56   ;;  %s1121_s17 = smov (!%p88_p2), 80  }
   0x9   : > { %s1122_s18 = smov (!%p88_p2), 112   ;;  %s1123_s19 = smov (!%p88_p2), 48  }
   0xa   : > { %s1124_s20 = smov (!%p88_p2), 72   ;;  %s1125_s21 = smov (!%p88_p2), 104  }
   0xb   : > { %s1126_s22 = smov (!%p88_p2), 40   ;;  %s1127_s23 = smov (!%p88_p2), 8  }
   0xc   : > { %s1128_s24 = smov (!%p88_p2), 16   ;;  %s1129_s25 = smov (!%p88_p2), 24  }
   0xd   : > { %s1288_s7 = smov (!%p107_p3, %s906_s7), 1 }
   0xe   : > { %s1035_s8 = smul.u32 24, %s1288_s7 }
  0x10   : > { %s111_s11 = scalar_lea.vmem %s1285_s0, %s1035_s8  ;;  %s116_s28 = scalar_lea.vmem %s1286_s1, %s1035_s8 }
  0x11   : > { %v118_v0 = vld [vmem:[%s111_s11] sm:$0xff]  ;;  %v119_v1 = vld [vmem:[%s111_s11 + $0x8] sm:$0xff]  ;;  %v120_v2 = vld [vmem:[%s111_s11 + $0x10] sm:$0x1] }
  0x12   : > { %v1156_v3 = vpack.c.bf16 %v119_v1, %v118_v0  ;;  %v1159_v4 = vpack.c.bf16 %v120_v2, %v120_v2 }
  0x14   : > { %125 = vrot.lane.b32.xlu0 %v1156_v3, %s1115_s12  ;;  %967 = vmatprep.mubr.msk.bf16.mxu0 %vm129_vm0, %v1156_v3 }
  0x18   : > { %127 = vrot.lane.b32.xlu0 %v1159_v4, %s1115_s12 }
  0x86   : > { %v126_v5 = vpop.permute.xlu0 %125 }
  0x87   : > { %1027 = vmatprep.subr.msk.bf16.mxu0 %vm129_vm0, %v126_v5  ;;  %v137_v6 = vsel %vm129_vm0, %v126_v5, 0 }
  0x88   : > { %964 = vmatpush3.bf16.xpose.msra.mxu0 %v137_v6 }
  0x8a   : > { %v128_v7 = vpop.permute.xlu0 %127 }
  0x8b   : > { %1028 = vmatprep.subr.msk.bf16.mxu0 %vm129_vm0, %v128_v7  ;;  %v140_v8 = vsel %vm129_vm0, %v128_v7, 0 }
  0x90   : > { %966 = vmatpush3.bf16.xpose.msra.mxu0 %v140_v8 }
  0x97   : > { %968 = vmatmul.mubr.msk.bf16.vlgmr.msra.gmra.mrb[0].mxu0 %vm129_vm0, %v1159_v4 }
 0x16a   : > { %v969_v9 = vpop.f32.mrb[0].mxu0 }
 0x16b   : > { %v192_v10 = vmul.f32 0.35355338, %v969_v9  ;;  %v176_v11 = vpop.f32.mrb[1].mxu0 }
 0x16c   : > { %v190_v12 = vmul.f32 0.35355338, %v176_v11  ;;  %v970_v13 = vpop.f32.mrb[2].mxu0 }
 0x16d   : > { %v179_v14 = vpop.f32.mrb[3].mxu0  ;;  %v201_v15 = vsel %vm200_vm1, %v192_v10, -inf }
 0x16e   : > { %v191_v16 = vmul.f32 0.35355338, %v179_v14  ;;  %202 = vmax.xlane.f32.xlu0 %v201_v15  ;;  %v194_v17 = vsel %vm193_vm2, %v190_v12, -inf }
 0x16f   : > { %195 = vmax.xlane.f32.xlu1 %v194_v17 }
 0x170   : > { %v197_v18 = vsel %vm193_vm2, %v191_v16, -inf }
 0x173   : > { %198 = vmax.xlane.f32.xlu1 %v197_v18 }
 0x184   : > { %230 = vrot.lane.b32.xlu1 %v1156_v3, %s1116_s13  ;;  %299 = vrot.lane.b32.xlu0 %v1156_v3, %s1117_s14 }
 0x1fb   : > { %v203_v19 = vpop.xlane.xlu0 %202 }
 0x1fc   : > { %v206_v20 = vsub.f32 %v192_v10, %v203_v19  ;;  %v196_v21 = vpop.xlane.xlu1 %195 }
 0x1fd   : > { %v204_v22 = vsub.f32 %v190_v12, %v196_v21 }
 0x1fe   : > { %v211_v23 = vmul.f32 1.442695, %v206_v20 }
 0x1ff   : > { %v207_v24 = vmul.f32 1.442695, %v204_v22  ;;  %v300_v42 = vpop.permute.xlu0 %299 }
 0x200   : > { %1059 = vpow2.f32 %v211_v23  ;;  %v199_v25 = vpop.xlane.xlu1 %198  ;;  %v310_v51 = vsel %vm129_vm0, %v300_v42, 0 }
 0x201   : > { %v205_v26 = vsub.f32 %v191_v16, %v199_v25  ;;  %1061 = vpow2.f32 %v207_v24 }
 0x203   : > { %v209_v27 = vmul.f32 1.442695, %v205_v26 }
 0x204   : > { %v231_v28 = vpop.permute.xlu1 %230 }
 0x205   : > { %971 = vmatprep.subr.bf16.mxu1 %v231_v28  ;;  %1063 = vpow2.f32 %v209_v27 }
 0x206   : > { %972 = vmatpush3.bf16.msra.mxu1 %v231_v28 }
 0x20a   : > { %v1060_v29 = vpop.eup %1059 }
 0x20b   : > { %v219_v30 = vsel %vm200_vm1, %v1060_v29, 0.0  ;;  %v1062_v31 = vpop.eup %1061 }
 0x20c   : > { %220 = vadd.xlane.f32.xlu1 %v219_v30  ;;  %v213_v32 = vsel %vm193_vm2, %v1062_v31, 0.0 }
 0x20f   : > { %v1064_v33 = vpop.eup %1063 }
 0x210   : > { %214 = vadd.xlane.f32.xlu1 %v213_v32  ;;  %v216_v34 = vsel %vm193_vm2, %v1064_v33, 0.0 }
 0x214   : > { %217 = vadd.xlane.f32.xlu1 %v216_v34 }
 0x225   : > { %232 = vrot.lane.b32.xlu1 %v1159_v4, %s1116_s13 }
 0x229   : > { %301 = vrot.lane.b32.xlu1 %v1159_v4, %s1117_s14 }
 0x22d   : > { %295 = vrot.lane.b32.xlu1 %v1156_v3, %s1118_s15 }
 0x231   : > { %297 = vrot.lane.b32.xlu1 %v1159_v4, %s1118_s15 }
 0x299   : > { %v221_v35 = vpop.xlane.xlu1 %220 }
 0x29a   : > { %1065 = vrcp.f32 %v221_v35 }
 0x29d   : > { %v215_v36 = vpop.xlane.xlu1 %214 }
 0x29e   : > { %1067 = vrcp.f32 %v215_v36 }
 0x2a1   : > { %v218_v37 = vpop.xlane.xlu1 %217 }
 0x2a2   : > { %1069 = vrcp.f32 %v218_v37 }
 0x2a4   : > { %v1066_v43 = vpop.eup %1065 }
 0x2a5   : > { %v233_v40 = vpop.permute.xlu1 %232  ;;  %v227_v47 = vmul.f32 %v1066_v43, %v1060_v29 }
 0x2a6   : > { %v245_v41 = vand.u32 %v1182_v39, %v233_v40 }
 0x2a7   : > { %v229_v52 = vpack.c.bf16 %v227_v47, %v227_v47 }
 0x2a8   : > { %973 = vmatprep.subr.bf16.mxu1 %v245_v41  ;;  %v1068_v44 = vpop.eup %1067 }
 0x2a9   : > { %974 = vmatpush3.bf16.msra.mxu1 %v245_v41  ;;  %v302_v45 = vpop.permute.xlu1 %301  ;;  %v225_v48 = vmul.f32 %v1068_v44, %v1062_v31 }
 0x2aa   : > { %1029 = vmatprep.subr.msk.bf16.mxu1 %vm129_vm0, %v300_v42  ;;  %v313_v54 = vsel %vm129_vm0, %v302_v45, 0 }
 0x2ac   : > { %v1070_v46 = vpop.eup %1069 }
 0x2ad   : > { %v226_v49 = vmul.f32 %v1070_v46, %v1064_v33  ;;  %v296_v53 = vpop.permute.xlu1 %295 }
 0x2af   : > { %v228_v50 = vpack.c.bf16 %v226_v49, %v225_v48 }
 0x2b1   : > { %975 = vmatprep.mubr.msk.bf16.mxu1 %vm193_vm2, %v228_v50  ;;  %v298_v55 = vpop.permute.xlu1 %297 }
 0x2b2   : > { %976 = vmatmul.mubr.msk.bf16.vlgmr.msra.gmra.mrb[0].mxu1 %vm193_vm2, %v229_v52 }
 0x2b3   : > { %980 = vmatpush3.bf16.xpose.msra.mxu1 %v310_v51  ;;  %983 = vmatprep.mubr.msk.bf16.mxu1 %vm129_vm0, %v296_v53 }
 0x2b4   : > { %1030 = vmatprep.subr.msk.bf16.mxu1 %vm129_vm0, %v302_v45 }
 0x2bb   : > { %982 = vmatpush3.bf16.xpose.msra.mxu1 %v313_v54 }
 0x2c2   : > { %984 = vmatmul.mubr.msk.bf16.vlgmr.msra.gmra.mrb[4].mxu1 %vm129_vm0, %v298_v55 }
 0x385   : > { %v1193_v56 = vpop.f32.mrb[0].mxu1 }
 0x386   : > { %v1195_v57 = vpop.f32.mrb[1].mxu1 }
 0x387   : > { %v978_v58 = vpop.f32.mrb[2].mxu1 }
 0x388   : > { %v1197_v59 = vpop.f32.mrb[3].mxu1 }
 0x395   : > { %v985_v60 = vpop.f32.mrb[4].mxu1 }
 0x396   : > { %v349_v61 = vpop.f32.mrb[5].mxu1  ;;  %v365_v1 = vmul.f32 0.35355338, %v985_v60 }
 0x397   : > { %v363_v62 = vmul.f32 0.35355338, %v349_v61  ;;  %v986_v63 = vpop.f32.mrb[6].mxu1 }
 0x398   : > { %v352_v0 = vpop.f32.mrb[7].mxu1  ;;  %v372_v7 = vsel %vm200_vm1, %v365_v1, -inf }
 0x399   : > { %v364_v2 = vmul.f32 0.35355338, %v352_v0  ;;  %v366_v5 = vsel %vm193_vm2, %v363_v62, -inf }
 0x39a   : > { %367 = vmax.xlane.f32.xlu1 %v366_v5 }
 0x39b   : > { %v369_v6 = vsel %vm193_vm2, %v364_v2, -inf }
 0x39c   : > { %370 = vmax.xlane.f32.xlu0 %v369_v6 }
 0x39e   : > { %373 = vmax.xlane.f32.xlu1 %v372_v7 }
 0x3af   : > { %401 = vrot.lane.b32.xlu1 %v1156_v3, %s1120_s16 }
 0x427   : > { %v368_v8 = vpop.xlane.xlu1 %367 }
 0x428   : > { %v375_v10 = vsub.f32 %v363_v62, %v368_v8 }
 0x429   : > { %v371_v9 = vpop.xlane.xlu0 %370 }
 0x42a   : > { %v376_v11 = vsub.f32 %v364_v2, %v371_v9  ;;  %v378_v15 = vmul.f32 1.442695, %v375_v10 }
 0x42b   : > { %v374_v12 = vpop.xlane.xlu1 %373 }
 0x42c   : > { %v380_v13 = vmul.f32 1.442695, %v376_v11  ;;  %v377_v14 = vsub.f32 %v365_v1, %v374_v12 }
 0x42e   : > { %1071 = vpow2.f32 %v380_v13  ;;  %v382_v16 = vmul.f32 1.442695, %v377_v14 }
 0x42f   : > { %v402_v17 = vpop.permute.xlu1 %401 }
 0x430   : > { %1073 = vpow2.f32 %v382_v16  ;;  %987 = vmatprep.subr.bf16.mxu0 %v402_v17 }
 0x431   : > { %988 = vmatpush3.bf16.msra.mxu0 %v402_v17  ;;  %1075 = vpow2.f32 %v378_v15 }
 0x438   : > { %v1072_v18 = vpop.eup %1071 }
 0x439   : > { %v387_v19 = vsel %vm193_vm2, %v1072_v18, 0.0 }
 0x43a   : > { %v1074_v20 = vpop.eup %1073  ;;  %388 = vadd.xlane.f32.xlu1 %v387_v19 }
 0x43b   : > { %v390_v21 = vsel %vm200_vm1, %v1074_v20, 0.0  ;;  %v1076_v22 = vpop.eup %1075 }
 0x43c   : > { %391 = vadd.xlane.f32.xlu0 %v390_v21  ;;  %v384_v23 = vsel %vm193_vm2, %v1076_v22, 0.0 }
 0x440   : > { %385 = vadd.xlane.f32.xlu0 %v384_v23 }
 0x44b   : > { %467 = vrot.lane.b32.xlu1 %v1156_v3, %s1121_s17 }
 0x44f   : > { %469 = vrot.lane.b32.xlu1 %v1159_v4, %s1121_s17 }
 0x453   : > { %465 = vrot.lane.b32.xlu1 %v1159_v4, %s1122_s18 }
 0x456   : > { %403 = vrot.lane.b32.xlu0 %v1159_v4, %s1120_s16 }
 0x45a   : > { %463 = vrot.lane.b32.xlu0 %v1156_v3, %s1122_s18 }
 0x4c7   : > { %v389_v24 = vpop.xlane.xlu1 %388 }
 0x4c9   : > { %v392_v25 = vpop.xlane.xlu0 %391 }
 0x4ca   : > { %1077 = vrcp.f32 %v392_v25 }
 0x4cb   : > { %1079 = vrcp.f32 %v389_v24  ;;  %v468_v29 = vpop.permute.xlu1 %467 }
 0x4cc   : > { %v478_v37 = vsel %vm129_vm0, %v468_v29, 0 }
 0x4cd   : > { %v386_v26 = vpop.xlane.xlu0 %385 }
 0x4ce   : > { %1081 = vrcp.f32 %v386_v26 }
 0x4cf   : > { %v470_v41 = vpop.permute.xlu1 %469 }
 0x4d0   : > { %v481_v42 = vsel %vm129_vm0, %v470_v41, 0 }
 0x4d1   : > { %v404_v27 = vpop.permute.xlu0 %403 }
 0x4d2   : > { %v413_v28 = vand.u32 %v404_v27, %v1182_v39 }
 0x4d3   : > { %v466_v43 = vpop.permute.xlu1 %465 }
 0x4d4   : > { %989 = vmatprep.subr.bf16.mxu0 %v413_v28  ;;  %v1078_v30 = vpop.eup %1077 }
 0x4d5   : > { %990 = vmatpush3.bf16.msra.mxu0 %v413_v28  ;;  %v1080_v31 = vpop.eup %1079  ;;  %v398_v33 = vmul.f32 %v1078_v30, %v1074_v20  ;;  %v464_v40 = vpop.permute.xlu0 %463 }
 0x4d6   : > { %1031 = vmatprep.subr.msk.bf16.mxu0 %vm129_vm0, %v468_v29  ;;  %v397_v35 = vmul.f32 %v1080_v31, %v1072_v18 }
 0x4d7   : > { %v400_v38 = vpack.c.bf16 %v398_v33, %v398_v33 }
 0x4d8   : > { %v1082_v32 = vpop.eup %1081 }
 0x4d9   : > { %v396_v34 = vmul.f32 %v1082_v32, %v1076_v22 }
 0x4db   : > { %v399_v36 = vpack.c.bf16 %v397_v35, %v396_v34 }
 0x4dd   : > { %991 = vmatprep.mubr.msk.bf16.mxu0 %vm193_vm2, %v399_v36 }
 0x4de   : > { %992 = vmatmul.mubr.msk.bf16.vlgmr.msra.gmra.mrb[4].mxu0 %vm193_vm2, %v400_v38 }
 0x4df   : > { %996 = vmatpush3.bf16.xpose.msra.mxu0 %v478_v37  ;;  %999 = vmatprep.mubr.msk.bf16.mxu0 %vm129_vm0, %v464_v40 }
 0x4e0   : > { %1032 = vmatprep.subr.msk.bf16.mxu0 %vm129_vm0, %v470_v41 }
 0x4e7   : > { %998 = vmatpush3.bf16.xpose.msra.mxu0 %v481_v42 }
 0x4ee   : > { %1000 = vmatmul.mubr.msk.bf16.vlgmr.msra.gmra.mrb[8].mxu0 %vm129_vm0, %v466_v43 }
 0x5b1   : > { %v1222_v44 = vpop.f32.mrb[4].mxu0 }
 0x5b2   : > { %v1224_v45 = vpop.f32.mrb[5].mxu0 }
 0x5b3   : > { %v994_v46 = vpop.f32.mrb[6].mxu0 }
 0x5b4   : > { %v1226_v47 = vpop.f32.mrb[7].mxu0 }
 0x5c1   : > { %v1001_v48 = vpop.f32.mrb[8].mxu0 }
 0x5c2   : > { %v517_v49 = vpop.f32.mrb[9].mxu0  ;;  %v533_v53 = vmul.f32 0.35355338, %v1001_v48 }
 0x5c3   : > { %v531_v50 = vmul.f32 0.35355338, %v517_v49  ;;  %v1002_v51 = vpop.f32.mrb[10].mxu0 }
 0x5c4   : > { %v520_v52 = vpop.f32.mrb[11].mxu0  ;;  %v540_v60 = vsel %vm200_vm1, %v533_v53, -inf }
 0x5c5   : > { %v532_v54 = vmul.f32 0.35355338, %v520_v52  ;;  %v534_v55 = vsel %vm193_vm2, %v531_v50, -inf }
 0x5c6   : > { %535 = vmax.xlane.f32.xlu0 %v534_v55 }
 0x5c7   : > { %v537_v58 = vsel %vm193_vm2, %v532_v54, -inf }
 0x5c8   : > { %538 = vmax.xlane.f32.xlu1 %v537_v58 }
 0x5ca   : > { %541 = vmax.xlane.f32.xlu0 %v540_v60 }
 0x5d9   : > { %569 = vrot.lane.b32.xlu1 %v1156_v3, %s1123_s19 }
 0x653   : > { %v536_v61 = vpop.xlane.xlu0 %535 }
 0x654   : > { %v543_v63 = vsub.f32 %v531_v50, %v536_v61 }
 0x655   : > { %v539_v62 = vpop.xlane.xlu1 %538 }
 0x656   : > { %v544_v0 = vsub.f32 %v532_v54, %v539_v62  ;;  %v546_v7 = vmul.f32 1.442695, %v543_v63 }
 0x657   : > { %v542_v1 = vpop.xlane.xlu0 %541 }
 0x658   : > { %v548_v2 = vmul.f32 1.442695, %v544_v0  ;;  %v545_v5 = vsub.f32 %v533_v53, %v542_v1 }
 0x659   : > { %v570_v6 = vpop.permute.xlu1 %569 }
 0x65a   : > { %1083 = vpow2.f32 %v548_v2  ;;  %v550_v8 = vmul.f32 1.442695, %v545_v5  ;;  %1003 = vmatprep.subr.bf16.mxu1 %v570_v6 }
 0x65b   : > { %1004 = vmatpush3.bf16.msra.mxu1 %v570_v6 }
 0x65c   : > { %1085 = vpow2.f32 %v550_v8 }
 0x65d   : > { %1087 = vpow2.f32 %v546_v7 }
 0x664   : > { %v1084_v9 = vpop.eup %1083 }
 0x665   : > { %v555_v10 = vsel %vm193_vm2, %v1084_v9, 0.0 }
 0x666   : > { %v1086_v11 = vpop.eup %1085  ;;  %556 = vadd.xlane.f32.xlu1 %v555_v10 }
 0x667   : > { %v558_v12 = vsel %vm200_vm1, %v1086_v11, 0.0  ;;  %v1088_v13 = vpop.eup %1087 }
 0x668   : > { %559 = vadd.xlane.f32.xlu0 %v558_v12  ;;  %v552_v14 = vsel %vm193_vm2, %v1088_v13, 0.0 }
 0x66c   : > { %553 = vadd.xlane.f32.xlu0 %v552_v14 }
 0x677   : > { %635 = vrot.lane.b32.xlu1 %v1156_v3, %s1124_s20 }
 0x67b   : > { %637 = vrot.lane.b32.xlu1 %v1159_v4, %s1124_s20 }
 0x67f   : > { %633 = vrot.lane.b32.xlu1 %v1159_v4, %s1125_s21 }
 0x682   : > { %571 = vrot.lane.b32.xlu0 %v1159_v4, %s1123_s19 }
 0x686   : > { %631 = vrot.lane.b32.xlu0 %v1156_v3, %s1125_s21 }
 0x6f3   : > { %v557_v15 = vpop.xlane.xlu1 %556 }
 0x6f5   : > { %v560_v16 = vpop.xlane.xlu0 %559 }
 0x6f6   : > { %1089 = vrcp.f32 %v560_v16 }
 0x6f7   : > { %1091 = vrcp.f32 %v557_v15  ;;  %v636_v20 = vpop.permute.xlu1 %635 }
 0x6f8   : > { %v646_v28 = vsel %vm129_vm0, %v636_v20, 0 }
 0x6f9   : > { %v554_v17 = vpop.xlane.xlu0 %553 }
 0x6fa   : > { %1093 = vrcp.f32 %v554_v17 }
 0x6fb   : > { %v638_v31 = vpop.permute.xlu1 %637 }
 0x6fc   : > { %v649_v32 = vsel %vm129_vm0, %v638_v31, 0 }
 0x6fd   : > { %v572_v18 = vpop.permute.xlu0 %571 }
 0x6fe   : > { %v581_v19 = vand.u32 %v572_v18, %v1182_v39 }
 0x6ff   : > { %v634_v33 = vpop.permute.xlu1 %633 }
 0x700   : > { %1005 = vmatprep.subr.bf16.mxu1 %v581_v19  ;;  %v1090_v21 = vpop.eup %1089 }
 0x701   : > { %1006 = vmatpush3.bf16.msra.mxu1 %v581_v19  ;;  %v1092_v22 = vpop.eup %1091  ;;  %v566_v24 = vmul.f32 %v1090_v21, %v1086_v11  ;;  %v632_v30 = vpop.permute.xlu0 %631 }
 0x702   : > { %1033 = vmatprep.subr.msk.bf16.mxu1 %vm129_vm0, %v636_v20  ;;  %v565_v26 = vmul.f32 %v1092_v22, %v1084_v9 }
 0x703   : > { %v568_v29 = vpack.c.bf16 %v566_v24, %v566_v24 }
 0x704   : > { %v1094_v23 = vpop.eup %1093 }
 0x705   : > { %v564_v25 = vmul.f32 %v1094_v23, %v1088_v13 }
 0x707   : > { %v567_v27 = vpack.c.bf16 %v565_v26, %v564_v25 }
 0x709   : > { %1007 = vmatprep.mubr.msk.bf16.mxu1 %vm193_vm2, %v567_v27 }
 0x70a   : > { %1008 = vmatmul.mubr.msk.bf16.vlgmr.msra.gmra.mrb[8].mxu1 %vm193_vm2, %v568_v29 }
 0x70b   : > { %1012 = vmatpush3.bf16.xpose.msra.mxu1 %v646_v28  ;;  %1015 = vmatprep.mubr.msk.bf16.mxu1 %vm129_vm0, %v632_v30 }
 0x70c   : > { %1034 = vmatprep.subr.msk.bf16.mxu1 %vm129_vm0, %v638_v31 }
 0x713   : > { %1014 = vmatpush3.bf16.xpose.msra.mxu1 %v649_v32 }
 0x71a   : > { %1016 = vmatmul.mubr.msk.bf16.vlgmr.msra.gmra.mrb[12].mxu1 %vm129_vm0, %v634_v33 }
 0x7dd   : > { %v1009_v34 = vpop.f32.mrb[8].mxu1 }
 0x7de   : > { %v617_v35 = vpop.f32.mrb[9].mxu1 }
 0x7df   : > { %v1010_v36 = vpop.f32.mrb[10].mxu1 }
 0x7e0   : > { %v620_v37 = vpop.f32.mrb[11].mxu1 }
 0x7ed   : > { %v1017_v38 = vpop.f32.mrb[12].mxu1 }
 0x7ee   : > { %v685_v40 = vpop.f32.mrb[13].mxu1  ;;  %v701_v46 = vmul.f32 0.35355338, %v1017_v38 }
 0x7ef   : > { %v699_v41 = vmul.f32 0.35355338, %v685_v40  ;;  %v1018_v42 = vpop.f32.mrb[14].mxu1 }
 0x7f0   : > { %v688_v43 = vpop.f32.mrb[15].mxu1  ;;  %v708_v51 = vsel %vm200_vm1, %v701_v46, -inf }
 0x7f1   : > { %v700_v48 = vmul.f32 0.35355338, %v688_v43  ;;  %v702_v49 = vsel %vm193_vm2, %v699_v41, -inf }
 0x7f2   : > { %703 = vmax.xlane.f32.xlu0 %v702_v49 }
 0x7f3   : > { %v705_v50 = vsel %vm193_vm2, %v700_v48, -inf }
 0x7f4   : > { %706 = vmax.xlane.f32.xlu1 %v705_v50 }
 0x7f6   : > { %709 = vmax.xlane.f32.xlu0 %v708_v51 }
 0x87f   : > { %v704_v52 = vpop.xlane.xlu0 %703 }
 0x880   : > { %v711_v54 = vsub.f32 %v699_v41, %v704_v52 }
 0x881   : > { %v707_v53 = vpop.xlane.xlu1 %706 }
 0x882   : > { %v712_v55 = vsub.f32 %v700_v48, %v707_v53  ;;  %v714_v62 = vmul.f32 1.442695, %v711_v54 }
 0x883   : > { %v710_v58 = vpop.xlane.xlu0 %709 }
 0x884   : > { %v716_v60 = vmul.f32 1.442695, %v712_v55  ;;  %v713_v61 = vsub.f32 %v701_v46, %v710_v58 }
 0x886   : > { %1095 = vpow2.f32 %v716_v60  ;;  %v718_v63 = vmul.f32 1.442695, %v713_v61 }
 0x888   : > { %1097 = vpow2.f32 %v718_v63 }
 0x889   : > { %1099 = vpow2.f32 %v714_v62 }
 0x890   : > { %v1096_v0 = vpop.eup %1095 }
 0x891   : > { %v723_v1 = vsel %vm193_vm2, %v1096_v0, 0.0 }
 0x892   : > { %v1098_v2 = vpop.eup %1097  ;;  %724 = vadd.xlane.f32.xlu1 %v723_v1 }
 0x893   : > { %v726_v5 = vsel %vm200_vm1, %v1098_v2, 0.0  ;;  %v1100_v6 = vpop.eup %1099 }
 0x894   : > { %727 = vadd.xlane.f32.xlu0 %v726_v5  ;;  %v720_v7 = vsel %vm193_vm2, %v1100_v6, 0.0 }
 0x898   : > { %721 = vadd.xlane.f32.xlu0 %v720_v7 }
 0x8a3   : > { %737 = vrot.lane.b32.xlu1 %v1156_v3, %s1126_s22 }
 0x8a7   : > { %802 = vrot.lane.b32.xlu1 %v1224_v45, %s1127_s23 }
 0x8ab   : > { %804 = vrot.lane.b32.xlu1 %v1226_v47, %s1127_s23 }
 0x8ae   : > { %739 = vrot.lane.b32.xlu0 %v1159_v4, %s1126_s22 }
 0x8af   : > { %814 = vrot.lane.b32.xlu1 %v617_v35, %s1128_s24 }
 0x8b2   : > { %806 = vrot.lane.b32.xlu0 %v1222_v44, %s1127_s23 }
 0x8b3   : > { %818 = vrot.lane.b32.xlu1 %v1009_v34, %s1128_s24 }
 0x8b6   : > { %816 = vrot.lane.b32.xlu0 %v620_v37, %s1128_s24 }
 0x91f   : > { %v725_v8 = vpop.xlane.xlu1 %724 }
 0x921   : > { %v728_v9 = vpop.xlane.xlu0 %727 }
 0x922   : > { %1101 = vrcp.f32 %v728_v9 }
 0x923   : > { %v738_v10 = vpop.permute.xlu1 %737  ;;  %1103 = vrcp.f32 %v725_v8 }
 0x924   : > { %1019 = vmatprep.subr.bf16.mxu0 %v738_v10 }
 0x925   : > { %v722_v3 = vpop.xlane.xlu0 %721  ;;  %1020 = vmatpush3.bf16.msra.mxu0 %v738_v10 }
 0x926   : > { %1105 = vrcp.f32 %v722_v3 }
 0x927   : > { %v803_v20 = vpop.permute.xlu1 %802 }
 0x928   : > { %v835_v26 = vsel %vm129_vm0, %v1195_v57, %v803_v20 }
 0x929   : > { %v740_v45 = vpop.permute.xlu0 %739 }
 0x92a   : > { %v749_v47 = vand.u32 %v740_v45, %v1182_v39 }
 0x92b   : > { %v805_v21 = vpop.permute.xlu1 %804 }
 0x92c   : > { %1021 = vmatprep.subr.bf16.mxu0 %v749_v47  ;;  %v1102_v4 = vpop.eup %1101  ;;  %v836_v29 = vsel %vm129_vm0, %v1197_v59, %v805_v21 }
 0x92d   : > { %1022 = vmatpush3.bf16.msra.mxu0 %v749_v47  ;;  %v1104_v11 = vpop.eup %1103  ;;  %v734_v44 = vmul.f32 %v1102_v4, %v1098_v2  ;;  %v807_v22 = vpop.permute.xlu0 %806 }
 0x92e   : > { %v733_v14 = vmul.f32 %v1104_v11, %v1096_v0  ;;  %v837_v57 = vsel %vm129_vm0, %v1193_v56, %v807_v22 }
 0x92f   : > { %v736_v16 = vpack.c.bf16 %v734_v44, %v734_v44  ;;  %v815_v23 = vpop.permute.xlu1 %814 }
 0x930   : > { %v1106_v12 = vpop.eup %1105  ;;  %v839_v27 = vsel %vm838_vm4, %v835_v26, %v815_v23 }
 0x931   : > { %v732_v13 = vmul.f32 %v1106_v12, %v1100_v6  ;;  %v817_v24 = vpop.permute.xlu0 %816 }
 0x932   : > { %v840_v31 = vsel %vm838_vm4, %v836_v29, %v817_v24 }
 0x933   : > { %v735_v15 = vpack.c.bf16 %v733_v14, %v732_v13  ;;  %v819_v25 = vpop.permute.xlu1 %818 }
 0x934   : > { %v841_v34 = vsel %vm838_vm4, %v837_v57, %v819_v25 }
 0x935   : > { %1023 = vmatprep.mubr.msk.bf16.mxu0 %vm193_vm2, %v735_v15 }
 0x936   : > { %1024 = vmatmul.mubr.msk.bf16.vlgmr.msra.gmra.mrb[12].mxu0 %vm193_vm2, %v736_v16 }
 0xa09   : > { %v1025_v17 = vpop.f32.mrb[12].mxu0 }
 0xa0a   : > { %v785_v18 = vpop.f32.mrb[13].mxu0 }
 0xa0b   : > { %826 = vrot.lane.b32.xlu0 %v785_v18, %s1129_s25  ;;  %v1026_v39 = vpop.f32.mrb[14].mxu0 }
 0xa0c   : > { %v788_v19 = vpop.f32.mrb[15].mxu0 }
 0xa0d   : > { %828 = vrot.lane.b32.xlu1 %v788_v19, %s1129_s25 }
 0xa0f   : > { %830 = vrot.lane.b32.xlu0 %v1025_v17, %s1129_s25 }
 0xa7d   : > { %v827_v28 = vpop.permute.xlu0 %826 }
 0xa7e   : > { %v843_v30 = vsel %vm842_vm5, %v839_v27, %v827_v28 }
 0xa7f   : > { %847 = vst.msk [vmem:[%s116_s28] sm:$0xff] %vm846_vm6, %v843_v30  ;;  %v829_v32 = vpop.permute.xlu1 %828 }
 0xa80   : > { %v844_v33 = vsel %vm842_vm5, %v840_v31, %v829_v32 }
 0xa81   : > { %848 = vst.msk [vmem:[%s116_s28 + $0x8] sm:$0xff] %vm846_vm6, %v844_v33  ;;  %v831_v35 = vpop.permute.xlu0 %830 }
 0xa82   : > { %v845_v36 = vsel %vm842_vm5, %v841_v34, %v831_v35 }
 0xa83   : > { %850 = vst.msk [vmem:[%s116_s28 + $0x10] sm:$0x1] %vm849_vm7, %v845_v36 }
 0xa84 PF: > { %s11_s6 = sadd.s32 1, %s1113_s6  }
 0xa85   : > { %p8_p4 = scmp.ge.s32.totalorder %s11_s6, 4  }
 0xa87   :  { %10 = sbr.rel (!%p8_p4) target bundleno = 1 (0x1), region = 54 }

// kernel: _lambda_.28
= control target key start
LH: loop header
LB: loop body
LE: loop exit
PB: predicated region body
PF: predicated region fallthrough
CT: control target
= control target key end

     0   :  { %vm19_vm0 = vcmask 261120   ;;  %vm32_vm1 = vcmask 254976   ;;  %s203_s0 = inlined_call_operand.vmem [shape: f32[34,32], index: 0, kind: input, shape index: {}]   ;;  %s204_s1 = inlined_call_operand.vmem [shape: f32[1,32], index: 1, kind: input, shape index: {}]   ;;  %s205_s2 = inlined_call_operand.vmem [shape: f32[1,32], index: 2, kind: input, shape index: {}]   ;;  %s206_s3 = inlined_call_operand.vmem [shape: f32[34,32], index: 3, kind: output, shape index: {}]  }
   0x1   :  { %v14_v0 = vld [vmem:[%s203_s0] sm:$0xff]  ;;  %v16_v1 = vld [vmem:[%s203_s0 + $0x10] sm:$0xff]  ;;  %v15_v2 = vld [vmem:[%s203_s0 + $0x8] sm:$0xff] }
   0x2   :  { %v20_v3 = vsel %vm19_vm0, %v14_v0, 0.0  ;;  %v26_v4 = vsel %vm19_vm0, %v16_v1, 0.0  ;;  %v17_v5 = vld [vmem:[%s203_s0 + $0x18] sm:$0xff]  ;;  %v23_v6 = vsel %vm19_vm0, %v15_v2, 0.0  ;;  %v18_v8 = vld [vmem:[%s203_s0 + $0x20] sm:$0x3] }
   0x3   :  { %21 = vadd.xlane.f32.xlu0 %v20_v3  ;;  %27 = vadd.xlane.f32.xlu1 %v26_v4  ;;  %v29_v7 = vsel %vm19_vm0, %v17_v5, 0.0  ;;  %v33_v9 = vsel %vm32_vm1, %v18_v8, 0.0  ;;  %v120_v51 = vld [vmem:[%s204_s1] ss:$0 sm:$0xff] }
   0x4   :  { %v121_v53 = vld [vmem:[%s205_s2] ss:$0 sm:$0xff] }
   0x7   :  { %24 = vadd.xlane.f32.xlu0 %v23_v6  ;;  %30 = vadd.xlane.f32.xlu1 %v29_v7 }
   0xb   :  { %34 = vadd.xlane.f32.xlu0 %v33_v9 }
  0x90   :  { %v22_v10 = vpop.xlane.xlu0 %21  ;;  %v28_v11 = vpop.xlane.xlu1 %27 }
  0x91   :  { %v37_v12 = vmul.f32 0.03125, %v22_v10  ;;  %v39_v13 = vmul.f32 0.03125, %v28_v11 }
  0x93   :  { %v42_v14 = vsub.f32 %v14_v0, %v37_v12  ;;  %v44_v15 = vsub.f32 %v16_v1, %v39_v13 }
  0x94   :  { %v25_v16 = vpop.xlane.xlu0 %24  ;;  %v31_v17 = vpop.xlane.xlu1 %30 }
  0x95   :  { %v38_v18 = vmul.f32 0.03125, %v25_v16  ;;  %v40_v19 = vmul.f32 0.03125, %v31_v17  ;;  %v47_v20 = vmul.f32 %v42_v14, %v42_v14  ;;  %v49_v21 = vmul.f32 %v44_v15, %v44_v15 }
  0x97   :  { %v43_v22 = vsub.f32 %v15_v2, %v38_v18  ;;  %v45_v23 = vsub.f32 %v17_v5, %v40_v19  ;;  %v52_v24 = vsel %vm19_vm0, %v47_v20, 0.0  ;;  %v58_v27 = vsel %vm19_vm0, %v49_v21, 0.0 }
  0x98   :  { %53 = vadd.xlane.f32.xlu1 %v52_v24  ;;  %v35_v25 = vpop.xlane.xlu0 %34 }
  0x99   :  { %v41_v26 = vmul.f32 0.03125, %v35_v25  ;;  %v48_v28 = vmul.f32 %v43_v22, %v43_v22  ;;  %v50_v29 = vmul.f32 %v45_v23, %v45_v23 }
  0x9b   :  { %v46_v30 = vsub.f32 %v18_v8, %v41_v26  ;;  %v55_v31 = vsel %vm19_vm0, %v48_v28, 0.0  ;;  %v61_v32 = vsel %vm19_vm0, %v50_v29, 0.0 }
  0x9c   :  { %59 = vadd.xlane.f32.xlu1 %v58_v27  ;;  %56 = vadd.xlane.f32.xlu0 %v55_v31 }
  0x9d   :  { %v51_v33 = vmul.f32 %v46_v30, %v46_v30 }
  0x9f   :  { %v64_v34 = vsel %vm32_vm1, %v51_v33, 0.0 }
  0xa0   :  { %62 = vadd.xlane.f32.xlu0 %v61_v32  ;;  %65 = vadd.xlane.f32.xlu1 %v64_v34 }
 0x125   :  { %v54_v35 = vpop.xlane.xlu1 %53 }
 0x126   :  { %v67_v36 = vmul.f32 0.03125, %v54_v35 }
 0x128   :  { %v72_v37 = vadd.f32 1e-05, %v67_v36 }
 0x129   :  { %v60_v38 = vpop.xlane.xlu1 %59  ;;  %v57_v39 = vpop.xlane.xlu0 %56 }
 0x12a   :  { %122 = vrsqrt.f32 %v72_v37  ;;  %v69_v40 = vmul.f32 0.03125, %v60_v38  ;;  %v68_v41 = vmul.f32 0.03125, %v57_v39 }
 0x12c   :  { %v74_v42 = vadd.f32 1e-05, %v69_v40  ;;  %v73_v43 = vadd.f32 1e-05, %v68_v41 }
 0x12d   :  { %v66_v44 = vpop.xlane.xlu1 %65  ;;  %v63_v45 = vpop.xlane.xlu0 %62 }
 0x12e   :  { %124 = vrsqrt.f32 %v74_v42  ;;  %v71_v46 = vmul.f32 0.03125, %v66_v44  ;;  %v70_v47 = vmul.f32 0.03125, %v63_v45 }
 0x12f   :  { %126 = vrsqrt.f32 %v73_v43 }
 0x130   :  { %v76_v48 = vadd.f32 1e-05, %v71_v46  ;;  %v75_v49 = vadd.f32 1e-05, %v70_v47 }
 0x132   :  { %128 = vrsqrt.f32 %v76_v48 }
 0x133   :  { %130 = vrsqrt.f32 %v75_v49 }
 0x134   :  { %v123_v50 = vpop.eup %122 }
 0x135   :  { %v82_v52 = vmul.f32 %v123_v50, %v42_v14 }
 0x137   :  { %v94_v54 = vmul.f32 %v120_v51, %v82_v52 }
 0x138   :  { %v125_v55 = vpop.eup %124 }
 0x139   :  { %v127_v56 = vpop.eup %126  ;;  %v106_v57 = vadd.f32 %v121_v53, %v94_v54  ;;  %v84_v58 = vmul.f32 %v125_v55, %v44_v15 }
 0x13a   :  { %v83_v59 = vmul.f32 %v127_v56, %v43_v22 }
 0x13b   :  { %111 = vst.msk [vmem:[%s206_s3] sm:$0xff] %vm19_vm0, %v106_v57  ;;  %v96_v60 = vmul.f32 %v120_v51, %v84_v58 }
 0x13c   :  { %v129_v61 = vpop.eup %128  ;;  %v95_v62 = vmul.f32 %v120_v51, %v83_v59 }
 0x13d   :  { %v131_v63 = vpop.eup %130  ;;  %v108_v0 = vadd.f32 %v121_v53, %v96_v60  ;;  %v86_v1 = vmul.f32 %v129_v61, %v46_v30 }
 0x13e   :  { %v107_v2 = vadd.f32 %v121_v53, %v95_v62  ;;  %v85_v3 = vmul.f32 %v131_v63, %v45_v23 }
 0x13f   :  { %113 = vst.msk [vmem:[%s206_s3 + $0x10] sm:$0xff] %vm19_vm0, %v108_v0  ;;  %v98_v4 = vmul.f32 %v120_v51, %v86_v1 }
 0x140   :  { %112 = vst.msk [vmem:[%s206_s3 + $0x8] sm:$0xff] %vm19_vm0, %v107_v2  ;;  %v97_v5 = vmul.f32 %v120_v51, %v85_v3 }
 0x141   :  { %v110_v6 = vadd.f32 %v121_v53, %v98_v4 }
 0x142   :  { %v109_v7 = vadd.f32 %v121_v53, %v97_v5 }
 0x143   :  { %115 = vst.msk [vmem:[%s206_s3 + $0x20] sm:$0x3] %vm32_vm1, %v110_v6 }
 0x144   :  { %114 = vst.msk [vmem:[%s206_s3 + $0x18] sm:$0xff] %vm19_vm0, %v109_v7 }

// kernel: _lambda_.23
= control target key start
LH: loop header
LB: loop body
LE: loop exit
PB: predicated region body
PF: predicated region fallthrough
CT: control target
= control target key end

     0   :  { %vm32_vm0 = vcmask 261120   ;;  %vm45_vm1 = vcmask 254976   ;;  %v459_v38 = vmov 0.0   ;;  %vm460_vm2 = vmmov 0   ;;  %s696_s0 = inlined_call_operand.vmem [shape: f32[34,32], index: 0, kind: input, shape index: {}]   ;;  %s697_s3 = inlined_call_operand.vmem [shape: f32[32,128], index: 3, kind: input, shape index: {}]   ;;  %s698_s1 = inlined_call_operand.vmem [shape: f32[1,32], index: 1, kind: input, shape index: {}]   ;;  %s699_s2 = inlined_call_operand.vmem [shape: f32[1,32], index: 2, kind: input, shape index: {}]   ;;  %s700_s5 = inlined_call_operand.vmem [shape: f32[128,32], index: 5, kind: input, shape index: {}]   ;;  %s701_s4 = inlined_call_operand.vmem [shape: f32[1,128], index: 4, kind: input, shape index: {}]   ;;  %s702_s6 = inlined_call_operand.vmem [shape: f32[1,32], index: 6, kind: input, shape index: {}]   ;;  %s703_s7 = inlined_call_operand.vmem [shape: f32[34,32], index: 7, kind: output, shape index: {}]  }
   0x1   :  { %v504_v0 = vld [vmem:[%s696_s0] sm:$0xff]  ;;  %v509_v1 = vld [vmem:[%s696_s0 + $0x10] sm:$0xff]  ;;  %v514_v2 = vld [vmem:[%s696_s0 + $0x8] sm:$0xff]  ;;  %377 = vmatprep.subr.bf16.mxu0 %v459_v38  ;;  %421 = vmatprep.subr.bf16.mxu1 %v459_v38 }
   0x2   :  { %v33_v3 = vsel %vm32_vm0, %v504_v0, 0.0  ;;  %v39_v4 = vsel %vm32_vm0, %v509_v1, 0.0  ;;  %v523_v5 = vld [vmem:[%s696_s0 + $0x18] sm:$0xff]  ;;  %v36_v6 = vsel %vm32_vm0, %v514_v2, 0.0  ;;  %v532_v8 = vld [vmem:[%s696_s0 + $0x20] sm:$0x3]  ;;  %381 = vmatprep.mubr.msk.bf16.mxu0 %vm460_vm2, %v459_v38  ;;  %413 = vmatprep.mubr.msk.bf16.mxu1 %vm460_vm2, %v459_v38 }
   0x3   :  { %34 = vadd.xlane.f32.xlu0 %v33_v3  ;;  %40 = vadd.xlane.f32.xlu1 %v39_v4  ;;  %v42_v7 = vsel %vm32_vm0, %v523_v5, 0.0  ;;  %v46_v9 = vsel %vm45_vm1, %v532_v8, 0.0  ;;  %v127_v35 = vld [vmem:[%s697_s3] sm:$0xff]  ;;  %v128_v36 = vld [vmem:[%s697_s3 + $0x8] sm:$0xff]  ;;  %v129_v39 = vld [vmem:[%s697_s3 + $0x10] sm:$0xff] }
   0x4   :  { %v131_v37 = vpack.c.bf16 %v128_v36, %v127_v35  ;;  %v130_v40 = vld [vmem:[%s697_s3 + $0x18] sm:$0xff]  ;;  %v354_v59 = vld [vmem:[%s698_s1] ss:$0 sm:$0xff]  ;;  %v262_v36 = vld [vmem:[%s700_s5 + $0x48] sm:$0xff] }
   0x5   :  { %v132_v41 = vpack.c.bf16 %v130_v40, %v129_v39  ;;  %v355_v3 = vld [vmem:[%s699_s2] ss:$0 sm:$0xff]  ;;  %v263_v39 = vld [vmem:[%s700_s5 + $0x50] sm:$0xff]  ;;  %v264_v40 = vld [vmem:[%s700_s5 + $0x58] sm:$0xff] }
   0x6   :  { %378 = vmatpush3.bf16.msra.mxu0 %v131_v37  ;;  %v261_v35 = vld [vmem:[%s700_s5 + $0x40] sm:$0xff] }
   0x7   :  { %37 = vadd.xlane.f32.xlu0 %v36_v6  ;;  %43 = vadd.xlane.f32.xlu1 %v42_v7  ;;  %v273_v37 = vpack.c.bf16 %v262_v36, %v261_v35 }
   0x8   :  { %379 = vmatprep.subr.bf16.mxu0 %v459_v38 }
   0xa   :  { %380 = vmatpush3.bf16.msra.mxu0 %v132_v41  ;;  %v274_v41 = vpack.c.bf16 %v264_v40, %v263_v39 }
   0xb   :  { %47 = vadd.xlane.f32.xlu0 %v46_v9  ;;  %393 = vmatprep.subr.bf16.mxu0 %v459_v38 }
  0x90   :  { %v35_v10 = vpop.xlane.xlu0 %34  ;;  %v41_v11 = vpop.xlane.xlu1 %40 }
  0x91   :  { %v50_v12 = vmul.f32 0.03125, %v35_v10  ;;  %v52_v13 = vmul.f32 0.03125, %v41_v11 }
  0x93   :  { %v537_v14 = vsub.f32 %v504_v0, %v50_v12  ;;  %v540_v15 = vsub.f32 %v509_v1, %v52_v13 }
  0x94   :  { %v38_v16 = vpop.xlane.xlu0 %37  ;;  %v44_v17 = vpop.xlane.xlu1 %43 }
  0x95   :  { %v51_v18 = vmul.f32 0.03125, %v38_v16  ;;  %v53_v19 = vmul.f32 0.03125, %v44_v17  ;;  %v60_v20 = vmul.f32 %v537_v14, %v537_v14  ;;  %v62_v21 = vmul.f32 %v540_v15, %v540_v15 }
  0x97   :  { %v56_v22 = vsub.f32 %v514_v2, %v51_v18  ;;  %v548_v23 = vsub.f32 %v523_v5, %v53_v19  ;;  %v65_v24 = vsel %vm32_vm0, %v60_v20, 0.0  ;;  %v71_v27 = vsel %vm32_vm0, %v62_v21, 0.0 }
  0x98   :  { %66 = vadd.xlane.f32.xlu1 %v65_v24  ;;  %v48_v25 = vpop.xlane.xlu0 %47  ;;  %v254_v24 = vld [vmem:[%s700_s5 + $0x8] sm:$0xff] }
  0x99   :  { %v54_v26 = vmul.f32 0.03125, %v48_v25  ;;  %v61_v28 = vmul.f32 %v56_v22, %v56_v22  ;;  %v63_v29 = vmul.f32 %v548_v23, %v548_v23 }
  0x9b   :  { %v555_v30 = vsub.f32 %v532_v8, %v54_v26  ;;  %v68_v31 = vsel %vm32_vm0, %v61_v28, 0.0  ;;  %v74_v32 = vsel %vm32_vm0, %v63_v29, 0.0  ;;  %v255_v26 = vld [vmem:[%s700_s5 + $0x10] sm:$0xff]  ;;  %v257_v29 = vld [vmem:[%s700_s5 + $0x20] sm:$0xff] }
  0x9c   :  { %72 = vadd.xlane.f32.xlu1 %v71_v27  ;;  %69 = vadd.xlane.f32.xlu0 %v68_v31  ;;  %v256_v27 = vld [vmem:[%s700_s5 + $0x18] sm:$0xff] }
  0x9d   :  { %v64_v33 = vmul.f32 %v555_v30, %v555_v30  ;;  %v270_v28 = vpack.c.bf16 %v256_v27, %v255_v26 }
  0x9f   :  { %v77_v34 = vsel %vm45_vm1, %v64_v33, 0.0  ;;  %v260_v33 = vld [vmem:[%s700_s5 + $0x38] sm:$0xff] }
  0xa0   :  { %75 = vadd.xlane.f32.xlu0 %v74_v32  ;;  %78 = vadd.xlane.f32.xlu1 %v77_v34  ;;  %v259_v32 = vld [vmem:[%s700_s5 + $0x30] sm:$0xff] }
  0xa1   :  { %v272_v34 = vpack.c.bf16 %v260_v33, %v259_v32 }
 0x125   :  { %v67_v42 = vpop.xlane.xlu1 %66 }
 0x126   :  { %v80_v43 = vmul.f32 0.03125, %v67_v42  ;;  %v265_v42 = vld [vmem:[%s700_s5 + $0x60] sm:$0xff] }
 0x128   :  { %v85_v44 = vadd.f32 1e-05, %v80_v43  ;;  %v266_v43 = vld [vmem:[%s700_s5 + $0x68] sm:$0xff] }
 0x129   :  { %v73_v45 = vpop.xlane.xlu1 %72  ;;  %v70_v46 = vpop.xlane.xlu0 %69 }
 0x12a   :  { %439 = vrsqrt.f32 %v85_v44  ;;  %v82_v47 = vmul.f32 0.03125, %v73_v45  ;;  %v81_v48 = vmul.f32 0.03125, %v70_v46  ;;  %v275_v44 = vpack.c.bf16 %v266_v43, %v265_v42  ;;  %v267_v45 = vld [vmem:[%s700_s5 + $0x70] sm:$0xff]  ;;  %v268_v46 = vld [vmem:[%s700_s5 + $0x78] sm:$0xff] }
 0x12c   :  { %v86_v49 = vadd.f32 1e-05, %v81_v48  ;;  %v87_v50 = vadd.f32 1e-05, %v82_v47  ;;  %v276_v47 = vpack.c.bf16 %v268_v46, %v267_v45  ;;  %v356_v48 = vld [vmem:[%s701_s4] ss:$0 sm:$0xff] }
 0x12d   :  { %v79_v51 = vpop.xlane.xlu1 %78  ;;  %v76_v52 = vpop.xlane.xlu0 %75 }
 0x12e   :  { %v83_v53 = vmul.f32 0.03125, %v76_v52  ;;  %441 = vrsqrt.f32 %v86_v49  ;;  %v84_v54 = vmul.f32 0.03125, %v79_v51 }
 0x12f   :  { %443 = vrsqrt.f32 %v87_v50 }
 0x130   :  { %v88_v55 = vadd.f32 1e-05, %v83_v53  ;;  %v89_v56 = vadd.f32 1e-05, %v84_v54 }
 0x132   :  { %445 = vrsqrt.f32 %v88_v55 }
 0x133   :  { %447 = vrsqrt.f32 %v89_v56 }
 0x134   :  { %v440_v57 = vpop.eup %439 }
 0x135   :  { %v95_v58 = vmul.f32 %v440_v57, %v537_v14 }
 0x137   :  { %v107_v62 = vmul.f32 %v354_v59, %v95_v58 }
 0x138   :  { %v442_v60 = vpop.eup %441 }
 0x139   :  { %v96_v61 = vmul.f32 %v442_v60, %v56_v22  ;;  %v444_v63 = vpop.eup %443  ;;  %v119_v10 = vadd.f32 %v355_v3, %v107_v62 }
 0x13a   :  { %v97_v7 = vmul.f32 %v444_v63, %v540_v15 }
 0x13b   :  { %v108_v4 = vmul.f32 %v354_v59, %v96_v61 }
 0x13c   :  { %v446_v6 = vpop.eup %445  ;;  %v109_v16 = vmul.f32 %v354_v59, %v97_v7 }
 0x13d   :  { %v98_v9 = vmul.f32 %v446_v6, %v548_v23  ;;  %v120_v11 = vadd.f32 %v355_v3, %v108_v4  ;;  %v448_v14 = vpop.eup %447  ;;  %v253_v23 = vld [vmem:[%s700_s5] sm:$0xff] }
 0x13e   :  { %v99_v17 = vmul.f32 %v448_v14, %v555_v30  ;;  %v121_v19 = vadd.f32 %v355_v3, %v109_v16  ;;  %v269_v25 = vpack.c.bf16 %v254_v24, %v253_v23  ;;  %v258_v30 = vld [vmem:[%s700_s5 + $0x28] sm:$0xff] }
 0x13f   :  { %v124_v12 = vpack.c.bf16 %v120_v11, %v119_v10  ;;  %v110_v13 = vmul.f32 %v354_v59, %v98_v9  ;;  %v271_v31 = vpack.c.bf16 %v258_v30, %v257_v29 }
 0x140   :  { %v111_v21 = vmul.f32 %v354_v59, %v99_v17  ;;  %429 = vmatpush3.bf16.msra.mxu1 %v269_v25 }
 0x141   :  { %382 = vmatmul.mubr.msk.bf16.vlgmr.msra.gmra.mrb[0].mxu0 %vm32_vm0, %v124_v12  ;;  %v122_v18 = vadd.f32 %v355_v3, %v110_v13  ;;  %422 = vmatprep.subr.bf16.mxu1 %v459_v38 }
 0x142   :  { %385 = vmatprep.mubr.msk.bf16.mxu0 %vm460_vm2, %v459_v38  ;;  %v123_v15 = vadd.f32 %v355_v3, %v111_v21  ;;  %394 = vmatpush3.bf16.msra.mxu0 %v269_v25 }
 0x143   :  { %v125_v20 = vpack.c.bf16 %v122_v18, %v121_v19  ;;  %395 = vmatprep.subr.bf16.mxu0 %v459_v38 }
 0x144   :  { %v126_v22 = vpack.c.bf16 %v123_v15, %v123_v15  ;;  %430 = vmatpush3.bf16.msra.mxu1 %v270_v28 }
 0x145   :  { %423 = vmatprep.subr.bf16.mxu1 %v459_v38 }
 0x146   :  { %396 = vmatpush3.bf16.msra.mxu0 %v270_v28 }
 0x147   :  { %397 = vmatprep.subr.bf16.mxu0 %v459_v38 }
 0x148   :  { %431 = vmatpush3.bf16.msra.mxu1 %v271_v31 }
 0x149   :  { %386 = vmatmul.mubr.msk.bf16.gmra.mrb[4].mxu0 %vm32_vm0, %v125_v20  ;;  %424 = vmatprep.subr.bf16.mxu1 %v459_v38 }
 0x14a   :  { %389 = vmatprep.mubr.msk.bf16.mxu0 %vm460_vm2, %v459_v38  ;;  %398 = vmatpush3.bf16.msra.mxu0 %v271_v31 }
 0x14b   :  { %399 = vmatprep.subr.bf16.mxu0 %v459_v38 }
 0x14c   :  { %432 = vmatpush3.bf16.msra.mxu1 %v272_v34 }
 0x14d   :  { %425 = vmatprep.subr.bf16.mxu1 %v459_v38 }
 0x14e   :  { %400 = vmatpush3.bf16.msra.mxu0 %v272_v34 }
 0x14f   :  { %401 = vmatprep.subr.bf16.mxu0 %v459_v38 }
 0x150   :  { %433 = vmatpush3.bf16.msra.mxu1 %v273_v37 }
 0x151   :  { %390 = vmatmul.mubr.msk.bf16.gmra.mrb[8].mxu0 %vm32_vm0, %v126_v22  ;;  %426 = vmatprep.subr.bf16.mxu1 %v459_v38 }
 0x152   :  { %409 = vmatprep.mubr.msk.bf16.mxu0 %vm460_vm2, %v459_v38  ;;  %402 = vmatpush3.bf16.msra.mxu0 %v273_v37 }
 0x153   :  { %403 = vmatprep.subr.bf16.mxu0 %v459_v38 }
 0x154   :  { %434 = vmatpush3.bf16.msra.mxu1 %v274_v41 }
 0x155   :  { %427 = vmatprep.subr.bf16.mxu1 %v459_v38 }
 0x156   :  { %404 = vmatpush3.bf16.msra.mxu0 %v274_v41 }
 0x157   :  { %405 = vmatprep.subr.bf16.mxu0 %v459_v38 }
 0x158   :  { %435 = vmatpush3.bf16.msra.mxu1 %v275_v44 }
 0x159   :  { %428 = vmatprep.subr.bf16.mxu1 %v459_v38 }
 0x15a   :  { %406 = vmatpush3.bf16.msra.mxu0 %v275_v44 }
 0x15b   :  { %407 = vmatprep.subr.bf16.mxu0 %v459_v38 }
 0x15c   :  { %436 = vmatpush3.bf16.msra.mxu1 %v276_v47 }
 0x15e   :  { %408 = vmatpush3.bf16.msra.mxu0 %v276_v47 }
 0x214   :  { %v183_v49 = vpop.f32.mrb[0].mxu0 }
 0x215   :  { %v184_v50 = vadd.f32 %v356_v48, %v183_v49  ;;  %v383_v51 = vpop.f32.mrb[1].mxu0 }
 0x216   :  { %v186_v52 = vpop.f32.mrb[2].mxu0 }
 0x217   :  { %v205_v53 = vmul.f32 %v184_v50, %v184_v50  ;;  %v187_v54 = vadd.f32 %v356_v48, %v186_v52  ;;  %v384_v55 = vpop.f32.mrb[3].mxu0 }
 0x219   :  { %v210_v56 = vmul.f32 %v205_v53, %v184_v50  ;;  %v206_v57 = vmul.f32 %v187_v54, %v187_v54 }
 0x21b   :  { %v215_v58 = vmul.f32 0.044715, %v210_v56  ;;  %v211_v59 = vmul.f32 %v206_v57, %v187_v54  ;;  %v360_v56 = vld [vmem:[%s702_s6] ss:$0 sm:$0xff] }
 0x21c   :  { %v191_v60 = vpop.f32.mrb[4].mxu0 }
 0x21d   :  { %v220_v61 = vadd.f32 %v215_v58, %v184_v50  ;;  %v216_v62 = vmul.f32 0.044715, %v211_v59  ;;  %v192_v63 = vadd.f32 %v356_v48, %v191_v60  ;;  %v387_v3 = vpop.f32.mrb[5].mxu0 }
 0x21e   :  { %v194_v4 = vpop.f32.mrb[6].mxu0 }
 0x21f   :  { %v225_v6 = vmul.f32 0.7978846, %v220_v61  ;;  %v221_v7 = vadd.f32 %v216_v62, %v187_v54  ;;  %v207_v9 = vmul.f32 %v192_v63, %v192_v63  ;;  %v195_v10 = vadd.f32 %v356_v48, %v194_v4  ;;  %v388_v11 = vpop.f32.mrb[7].mxu0 }
 0x221   :  { %449 = vtanh.f32 %v225_v6  ;;  %v226_v12 = vmul.f32 0.7978846, %v221_v7  ;;  %v212_v13 = vmul.f32 %v207_v9, %v192_v63  ;;  %v208_v14 = vmul.f32 %v195_v10, %v195_v10 }
 0x223   :  { %451 = vtanh.f32 %v226_v12  ;;  %v217_v16 = vmul.f32 0.044715, %v212_v13  ;;  %v213_v17 = vmul.f32 %v208_v14, %v195_v10 }
 0x224   :  { %v199_v18 = vpop.f32.mrb[8].mxu0 }
 0x225   :  { %v222_v19 = vadd.f32 %v217_v16, %v192_v63  ;;  %v218_v20 = vmul.f32 0.044715, %v213_v17  ;;  %v200_v21 = vadd.f32 %v356_v48, %v199_v18  ;;  %v391_v15 = vpop.f32.mrb[9].mxu0 }
 0x226   :  { %v202_v22 = vpop.f32.mrb[10].mxu0 }
 0x227   :  { %v227_v23 = vmul.f32 0.7978846, %v222_v19  ;;  %v223_v24 = vadd.f32 %v218_v20, %v195_v10  ;;  %v209_v25 = vmul.f32 %v200_v21, %v200_v21  ;;  %v392_v26 = vpop.f32.mrb[11].mxu0 }
 0x229   :  { %453 = vtanh.f32 %v227_v23  ;;  %v228_v27 = vmul.f32 0.7978846, %v223_v24  ;;  %v214_v28 = vmul.f32 %v209_v25, %v200_v21 }
 0x22b   :  { %v450_v29 = vpop.eup %449  ;;  %455 = vtanh.f32 %v228_v27  ;;  %v219_v30 = vmul.f32 0.044715, %v214_v28 }
 0x22c   :  { %v235_v31 = vadd.f32 1.0, %v450_v29 }
 0x22d   :  { %v452_v32 = vpop.eup %451  ;;  %v224_v33 = vadd.f32 %v219_v30, %v200_v21 }
 0x22e   :  { %v240_v34 = vmul.f32 0.5, %v235_v31  ;;  %v236_v35 = vadd.f32 1.0, %v452_v32 }
 0x22f   :  { %v229_v36 = vmul.f32 0.7978846, %v224_v33 }
 0x230   :  { %v241_v37 = vmul.f32 0.5, %v236_v35  ;;  %v245_v39 = vmul.f32 %v240_v34, %v184_v50 }
 0x231   :  { %457 = vtanh.f32 %v229_v36 }
 0x232   :  { %v246_v40 = vmul.f32 %v241_v37, %v187_v54 }
 0x233   :  { %v454_v41 = vpop.eup %453 }
 0x234   :  { %v250_v42 = vpack.c.bf16 %v246_v40, %v245_v39  ;;  %v237_v43 = vadd.f32 1.0, %v454_v41 }
 0x235   :  { %v456_v44 = vpop.eup %455 }
 0x236   :  { %410 = vmatmul.mubr.bf16.vlgmr.msra.gmra.mrb[12].mxu0 %v250_v42  ;;  %v238_v45 = vadd.f32 1.0, %v456_v44  ;;  %v242_v46 = vmul.f32 0.5, %v237_v43 }
 0x238   :  { %v243_v47 = vmul.f32 0.5, %v238_v45  ;;  %v247_v48 = vmul.f32 %v242_v46, %v192_v63 }
 0x23a   :  { %v248_v49 = vmul.f32 %v243_v47, %v195_v10 }
 0x23b   :  { %v458_v51 = vpop.eup %457 }
 0x23c   :  { %v251_v52 = vpack.c.bf16 %v248_v49, %v247_v48  ;;  %v239_v53 = vadd.f32 1.0, %v458_v51 }
 0x23e   :  { %414 = vmatmul.mubr.bf16.vlgmr.msra.gmra.mrb[0].mxu1 %v251_v52  ;;  %v244_v55 = vmul.f32 0.5, %v239_v53 }
 0x23f   :  { %417 = vmatprep.mubr.msk.bf16.mxu1 %vm460_vm2, %v459_v38 }
 0x240   :  { %v249_v50 = vmul.f32 %v244_v55, %v200_v21 }
 0x242   :  { %v252_v54 = vpack.c.bf16 %v249_v50, %v249_v50 }
 0x246   :  { %418 = vmatmul.mubr.bf16.gmra.mrb[4].mxu1 %v252_v54 }
 0x309   :  { %v318_v57 = vpop.f32.mrb[12].mxu0 }
 0x30a   :  { %v319_v58 = vadd.f32 %v360_v56, %v318_v57  ;;  %v411_v59 = vpop.f32.mrb[13].mxu0 }
 0x30b   :  { %v321_v60 = vpop.f32.mrb[14].mxu0 }
 0x30c   :  { %v340_v61 = vadd.f32 %v319_v58, %v504_v0  ;;  %v322_v62 = vadd.f32 %v360_v56, %v321_v60  ;;  %v412_v63 = vpop.f32.mrb[15].mxu0 }
 0x30e   :  { %345 = vst.msk [vmem:[%s703_s7] sm:$0xff] %vm32_vm0, %v340_v61  ;;  %v341_v38 = vadd.f32 %v322_v62, %v514_v2 }
 0x310   :  { %346 = vst.msk [vmem:[%s703_s7 + $0x8] sm:$0xff] %vm32_vm0, %v341_v38 }
 0x311   :  { %v326_v3 = vpop.f32.mrb[0].mxu1 }
 0x312   :  { %v327_v4 = vadd.f32 %v360_v56, %v326_v3  ;;  %v415_v6 = vpop.f32.mrb[1].mxu1 }
 0x313   :  { %v329_v7 = vpop.f32.mrb[2].mxu1 }
 0x314   :  { %v342_v0 = vadd.f32 %v327_v4, %v509_v1  ;;  %v330_v9 = vadd.f32 %v360_v56, %v329_v7  ;;  %v416_v10 = vpop.f32.mrb[3].mxu1 }
 0x316   :  { %347 = vst.msk [vmem:[%s703_s7 + $0x10] sm:$0xff] %vm32_vm0, %v342_v0  ;;  %v343_v2 = vadd.f32 %v330_v9, %v523_v5 }
 0x318   :  { %348 = vst.msk [vmem:[%s703_s7 + $0x18] sm:$0xff] %vm32_vm0, %v343_v2 }
 0x319   :  { %v334_v11 = vpop.f32.mrb[4].mxu1 }
 0x31a   :  { %v335_v12 = vadd.f32 %v360_v56, %v334_v11  ;;  %v419_v13 = vpop.f32.mrb[5].mxu1 }
 0x31b   :  { %v337_v14 = vpop.f32.mrb[6].mxu1 }
 0x31c   :  { %v344_v1 = vadd.f32 %v335_v12, %v532_v8  ;;  %v420_v16 = vpop.f32.mrb[7].mxu1 }
 0x31e   :  { %349 = vst.msk [vmem:[%s703_s7 + $0x20] sm:$0x3] %vm45_vm1, %v344_v1 }

// kernel: _lambda_.37
= control target key start
LH: loop header
LB: loop body
LE: loop exit
PB: predicated region body
PF: predicated region fallthrough
CT: control target
= control target key end

     0   :  { %vm34_vm0 = vcmask 261120   ;;  %vm114_vm1 = vcmask 392192   ;;  %s217_s1 = inlined_call_operand.vmem [shape: f32[32,48], index: 1, kind: input, shape index: {}]   ;;  %s218_s0 = inlined_call_operand.vmem [shape: f32[32,32], index: 0, kind: input, shape index: {}]   ;;  %s219_s2 = inlined_call_operand.vmem [shape: f32[1,48], index: 2, kind: input, shape index: {}]   ;;  %s220_s3 = inlined_call_operand.vmem [shape: f32[32,48], index: 3, kind: output, shape index: {}]  }
   0x1   :  { %v21_v0 = vld [vmem:[%s217_s1] sm:$0xff]  ;;  %v22_v1 = vld [vmem:[%s217_s1 + $0x8] sm:$0xff]  ;;  %v23_v2 = vld [vmem:[%s217_s1 + $0x10] sm:$0xff] }
   0x2   :  { %v25_v3 = vpack.c.bf16 %v22_v1, %v21_v0  ;;  %v24_v4 = vld [vmem:[%s217_s1 + $0x18] sm:$0xff]  ;;  %v15_v5 = vld [vmem:[%s218_s0] sm:$0xff]  ;;  %v16_v6 = vld [vmem:[%s218_s0 + $0x8] sm:$0xff] }
   0x3   :  { %v26_v7 = vpack.c.bf16 %v24_v4, %v23_v2  ;;  %v19_v8 = vpack.c.bf16 %v16_v6, %v15_v5  ;;  %v17_v9 = vld [vmem:[%s218_s0 + $0x10] sm:$0xff]  ;;  %v18_v10 = vld [vmem:[%s218_s0 + $0x18] sm:$0xff]  ;;  %v123_v12 = vld [vmem:[%s219_s2] ss:$0 sm:$0xff] }
   0x4   :  { %134 = vmatprep.subr.bf16.mxu0 %v25_v3  ;;  %v20_v11 = vpack.c.bf16 %v18_v10, %v17_v9 }
   0x5   :  { %135 = vmatpush3.bf16.msra.mxu0 %v25_v3  ;;  %138 = vmatprep.mubr.msk.bf16.mxu0 %vm34_vm0, %v19_v8 }
   0x6   :  { %136 = vmatprep.subr.bf16.mxu0 %v26_v7 }
   0x9   :  { %137 = vmatpush3.bf16.msra.mxu0 %v26_v7 }
   0xc   :  { %139 = vmatmul.mubr.msk.bf16.vlgmr.msra.gmra.mrb[0].mxu0 %vm34_vm0, %v20_v11 }
  0xdf   :  { %v140_v13 = vpop.f32.mrb[0].mxu0 }
  0xe0   :  { %v84_v14 = vadd.f32 %v140_v13, %v123_v12  ;;  %v75_v15 = vpop.f32.mrb[1].mxu0 }
  0xe1   :  { %v76_v16 = vadd.f32 %v123_v12, %v75_v15  ;;  %v141_v17 = vpop.f32.mrb[2].mxu0 }
  0xe2   :  { %v128_v18 = vmul.f32 -1.442695, %v84_v14  ;;  %v87_v19 = vadd.f32 %v141_v17, %v123_v12  ;;  %v78_v20 = vpop.f32.mrb[3].mxu0 }
  0xe3   :  { %v126_v21 = vmul.f32 -1.442695, %v76_v16  ;;  %v79_v22 = vadd.f32 %v123_v12, %v78_v20 }
  0xe4   :  { %142 = vpow2.f32 %v128_v18  ;;  %v129_v23 = vmul.f32 -1.442695, %v87_v19 }
  0xe5   :  { %144 = vpow2.f32 %v126_v21  ;;  %v127_v24 = vmul.f32 -1.442695, %v79_v22 }
  0xe6   :  { %146 = vpow2.f32 %v129_v23 }
  0xe7   :  { %148 = vpow2.f32 %v127_v24 }
  0xee   :  { %v143_v25 = vpop.eup %142 }
  0xef   :  { %v145_v26 = vpop.eup %144  ;;  %v104_v27 = vadd.f32 1.0, %v143_v25 }
  0xf0   :  { %v147_v28 = vpop.eup %146  ;;  %v102_v29 = vadd.f32 1.0, %v145_v26 }
  0xf1   :  { %v149_v30 = vpop.eup %148  ;;  %150 = vrcp.f32 %v104_v27  ;;  %v105_v31 = vadd.f32 1.0, %v147_v28 }
  0xf2   :  { %152 = vrcp.f32 %v102_v29  ;;  %v103_v32 = vadd.f32 1.0, %v149_v30 }
  0xf3   :  { %154 = vrcp.f32 %v105_v31 }
  0xf4   :  { %156 = vrcp.f32 %v103_v32 }
  0xfb   :  { %v151_v33 = vpop.eup %150 }
  0xfc   :  { %v153_v34 = vpop.eup %152  ;;  %117 = vst.msk [vmem:[%s220_s3 + $0x10] sm:$0xff] %vm114_vm1, %v151_v33 }
  0xfd   :  { %v155_v35 = vpop.eup %154  ;;  %115 = vst.msk [vmem:[%s220_s3] sm:$0xff] %vm114_vm1, %v153_v34 }
  0xfe   :  { %v157_v36 = vpop.eup %156  ;;  %118 = vst.msk [vmem:[%s220_s3 + $0x18] sm:$0xff] %vm114_vm1, %v155_v35 }
  0xff   :  { %116 = vst.msk [vmem:[%s220_s3 + $0x8] sm:$0xff] %vm114_vm1, %v157_v36 }

</bundles_post_ra>
